<compile_context>
chip_gen: v7x
topology: tpu7x:2x2x1
jax: 0.10.0
libtpu: 0.0.40
codegen_flags: <defaults>
</compile_context>

<pallas_src>
import functools

import numpy as np
import jax
import jax.numpy as jnp
from jax import lax
from jax.experimental import pallas as pl
from jax.experimental.pallas import tpu as pltpu

BN_EPS = 1e-5
NEG_SLOPE = 0.2


def _vmem_limit_bytes():
    """~3/4 of physical VMEM (v5e/v6e: ~96 MiB, v7x: ~48 MiB), capped at 112 MiB."""
    try:
        cap = int(pltpu.get_tpu_info().vmem_capacity_bytes)
    except Exception:
        cap = 128 * 1024 * 1024
    return min((cap * 3) // 4, 112 * 1024 * 1024)


# --------------------------------- kernel ------------------------------------
def resnet12_block_kernel(x_ref, hw_ref, wrc_ref, w2_ref, w3_ref, gb_ref,
                          out_ref, *, H, W):
    Cout = w3_ref.shape[0]
    NHW = x_ref.shape[1]
    inv_n = 1.0 / NHW

    def leaky(y):
        return jnp.where(y > 0, y, NEG_SLOPE * y)

    def batchnorm(y, g, b):
        # training-mode BN over lanes (= all of N, H, W); two-pass centered variance.
        mean = jnp.sum(y, axis=1, keepdims=True) * inv_n
        yc = y - mean
        var = jnp.sum(yc * yc, axis=1, keepdims=True) * inv_n
        return yc * (g * lax.rsqrt(var + BN_EPS)) + b

    def shift(t, s):
        # result[:, r] = t[:, r + s]  (circular; wrapped lanes are masked by caller)
        if s == 0:
            return t
        return pltpu.roll(t, shift=(-s) % NHW, axis=1)

    # per-lane (h, w) coordinates precomputed host-side (no pow2 restriction);
    # 4 elementary boundary predicates cover all 8 off-center taps and also
    # block leakage across batch elements in the flat lane layout.
    hw = hw_ref[...]
    hh = hw[0:1, :]
    ww = hw[1:2, :]
    h_lo, h_hi = hh > 0, hh < H - 1          # (h-1) valid / (h+1) valid
    w_lo, w_hi = ww > 0, ww < W - 1          # (w-1) valid / (w+1) valid

    def tap_mask(dh, dw):
        m = None
        if dh == -1:
            m = h_lo
        elif dh == 1:
            m = h_hi
        if dw == -1:
            m = w_lo if m is None else (m & w_lo)
        elif dw == 1:
            m = w_hi if m is None else (m & w_hi)
        return m                              # None => always valid (center)

    x = x_ref[...]                                            # (Cin, NHW) bf16

    # ---- residual 1x1 conv and conv1 fused into one matmul, fused BN ----------
    y = jnp.dot(wrc_ref[...], x, preferred_element_type=jnp.float32)   # (2C, NHW)
    y = batchnorm(y, gb_ref[:, 0:1], gb_ref[:, 1:2])
    residual = y[:Cout, :].astype(jnp.bfloat16)               # bf16 until final add
    out = leaky(y[Cout:, :])                                  # (C, NHW) f32

    # ---- conv2: 3x3 / s1 / p1 as 9 accumulated per-tap matmuls ----------------
    # each tap is rolled, masked, cast to bf16, consumed by the MXU and dropped.
    acc = None
    for t in range(9):
        dh, dw = t // 3 - 1, t % 3 - 1
        tap = shift(out, dh * W + dw)
        m = tap_mask(dh, dw)
        if m is not None:
            tap = jnp.where(m, tap, 0.0)
        p = jnp.dot(w2_ref[t], tap.astype(jnp.bfloat16),
                    preferred_element_type=jnp.float32)
        acc = p if acc is None else acc + p
    out = leaky(batchnorm(acc, gb_ref[:Cout, 2:3], gb_ref[:Cout, 3:4]))

    # ---- conv3 (1x1) + BN, add residual, LeakyReLU -----------------------------
    acc = jnp.dot(w3_ref[...], out.astype(jnp.bfloat16),
                  preferred_element_type=jnp.float32)
    out = leaky(batchnorm(acc, gb_ref[Cout:, 2:3], gb_ref[Cout:, 3:4]) + residual)

    # ---- maxpool 3x3 / s1 / p1 (dense map), separable: w-pass then h-pass -----
    # (the stride-2 lane subsample is a single strided slice in the wrapper)
    m_w = out
    m_w = jnp.maximum(m_w, jnp.where(w_lo, shift(out, -1), -jnp.inf))
    m_w = jnp.maximum(m_w, jnp.where(w_hi, shift(out, +1), -jnp.inf))
    dense = m_w
    dense = jnp.maximum(dense, jnp.where(h_lo, shift(m_w, -W), -jnp.inf))
    dense = jnp.maximum(dense, jnp.where(h_hi, shift(m_w, +W), -jnp.inf))

    out_ref[...] = dense.astype(out_ref.dtype)                # bf16 store


# ----------------------------- lane-dense wrappers ----------------------------
def nchw_to_lane(x_nchw):
    """NCHW -> lane-dense (C, N*H*W) bf16. Pay this once at the network entry."""
    N, C, H, W = x_nchw.shape
    return jnp.transpose(x_nchw, (1, 0, 2, 3)).reshape(C, N * H * W).astype(jnp.bfloat16)


def lane_to_nchw(x_lane, N, H, W):
    """lane-dense (C, N*H*W) -> NCHW. Pay this once at the network exit."""
    C = x_lane.shape[0]
    return jnp.transpose(x_lane.reshape(C, N, H, W), (1, 0, 2, 3))


def resnet12_block_lane(x_lane, params, *, N, H, W):
    """One ResNet12Block on a lane-dense (Cin, N*H*W) bf16 activation.
    Returns (out_lane (Cout, N*Ho*Wo) bf16, (Ho, Wo)). Chain these directly
    between blocks; only convert to/from NCHW at the edges."""
    w_res, w1, w2, w3, gammas, betas = (
        params["w_res"], params["w1"], params["w2"], params["w3"],
        params["gammas"], params["betas"])

    Cin = x_lane.shape[0]
    Cout = w1.shape[0]
    NHW = N * H * W
    assert x_lane.shape == (Cin, NHW), x_lane.shape

    # host-precomputed per-lane (h, w) coordinates (lifts the pow2 H/W restriction)
    hh = np.tile(np.repeat(np.arange(H, dtype=np.int32), W), N)
    ww = np.tile(np.arange(W, dtype=np.int32), N * H)
    hw = jnp.asarray(np.stack([hh, ww], axis=0))                        # (2, NHW)

    # residual-conv + conv1 fused weight; conv2 per-tap weights; conv3 weight
    wrc = jnp.concatenate([w_res[:, :, 0, 0], w1[:, :, 0, 0]],
                          axis=0).astype(jnp.bfloat16)                  # (2C, Cin)
    w2_t = jnp.transpose(w2, (2, 3, 0, 1)).reshape(
        9, Cout, Cout).astype(jnp.bfloat16)                             # (9, C, C)
    w3_k = w3[:, :, 0, 0].astype(jnp.bfloat16)                          # (C, C)

    # BN affine params packed: cols = [gamma_{res,1}, beta_{res,1}, gamma_{2,3}, beta_{2,3}]
    gb = jnp.stack([
        jnp.concatenate([gammas[0], gammas[1]]),
        jnp.concatenate([betas[0], betas[1]]),
        jnp.concatenate([gammas[2], gammas[3]]),
        jnp.concatenate([betas[2], betas[3]]),
    ], axis=1).astype(jnp.float32)                                      # (2C, 4)

    kernel = functools.partial(resnet12_block_kernel, H=H, W=W)
    inputs = (x_lane.astype(jnp.bfloat16), hw, wrc, w2_t, w3_k, gb)

    def full_spec(a):
        nd = a.ndim
        return pl.BlockSpec(a.shape, lambda i, nd=nd: (0,) * nd)

    # TODO(synk): for v7x, tile the NHW lane axis across both TensorCores
    # ("parallel" lane tiles) and exchange the (C,1) BN partial sums through
    # CMEM/VMEM_SHARED + core_barrier; today the block runs as one resident tile.
    dense = pl.pallas_call(
        kernel,
        grid=(1,),
        in_specs=[full_spec(a) for a in inputs],
        out_specs=pl.BlockSpec((Cout, NHW), lambda i: (0, 0)),
        out_shape=jax.ShapeDtypeStruct((Cout, NHW), jnp.bfloat16),
        compiler_params=pltpu.CompilerParams(
            dimension_semantics=("arbitrary",),
            vmem_limit_bytes=_vmem_limit_bytes()),
    )(*inputs)

    # stride-2 subsample of the dense pooled map, staying lane-dense
    # (single strided slice on bf16, no transpose).
    # TODO(synk): fold this subsample into the kernel once Mosaic exposes a
    # strided-lane slice/gather for the lane-major layout.
    Ho, Wo = (H + 1) // 2, (W + 1) // 2
    out_lane = dense.reshape(Cout, N, H, W)[:, :, ::2, ::2].reshape(Cout, N * Ho * Wo)
    return out_lane, (Ho, Wo)


def resnet12_block_forward(x_nchw, params):
    """NCHW-in / NCHW-out wrapper (spec parity with the PyTorch module)."""
    N, _, H, W = x_nchw.shape
    out_lane, (Ho, Wo) = resnet12_block_lane(nchw_to_lane(x_nchw), params,
                                             N=N, H=H, W=W)
    return lane_to_nchw(out_lane, N, Ho, Wo)


# ----------------------------- pure-JAX reference -----------------------------
def reference_forward(x, params):
    w_res, w1, w2, w3, gammas, betas = (
        params["w_res"], params["w1"], params["w2"], params["w3"],
        params["gammas"], params["betas"])

    def conv(y, w, pad):
        return lax.conv_general_dilated(
            y, w, window_strides=(1, 1),
            padding=((pad, pad), (pad, pad)),
            dimension_numbers=("NCHW", "OIHW", "NCHW"))

    def bn(y, k):
        g = gammas[k].reshape(1, -1, 1, 1)
        b = betas[k].reshape(1, -1, 1, 1)
        mean = y.mean(axis=(0, 2, 3), keepdims=True)
        var = ((y - mean) ** 2).mean(axis=(0, 2, 3), keepdims=True)
        return (y - mean) / jnp.sqrt(var + BN_EPS) * g + b

    lrelu = lambda y: jnp.where(y > 0, y, NEG_SLOPE * y)

    residual = bn(conv(x, w_res, 0), 0)
    out = lrelu(bn(conv(x, w1, 0), 1))
    out = lrelu(bn(conv(out, w2, 1), 2))
    out = bn(conv(out, w3, 0), 3)
    out = lrelu(out + residual)
    out = lax.reduce_window(out, -jnp.inf, lax.max,
                            window_dimensions=(1, 1, 3, 3),
                            window_strides=(1, 1, 2, 2),
                            padding=((0, 0), (0, 0), (1, 1), (1, 1)))
    return out


if __name__ == "__main__":
    N, Cin, Cout, H, W = 2, 4, 8, 16, 16     # inplanes=4, planes=8

    key = jax.random.PRNGKey(0)
    ks = jax.random.split(key, 7)
    x = jax.random.normal(ks[0], (N, Cin, H, W), jnp.float32)
    params = {
        "w_res": 0.3 * jax.random.normal(ks[1], (Cout, Cin, 1, 1), jnp.float32),
        "w1":    0.3 * jax.random.normal(ks[2], (Cout, Cin, 1, 1), jnp.float32),
        "w2":    0.2 * jax.random.normal(ks[3], (Cout, Cout, 3, 3), jnp.float32),
        "w3":    0.3 * jax.random.normal(ks[4], (Cout, Cout, 1, 1), jnp.float32),
        "gammas": 1.0 + 0.1 * jax.random.normal(ks[5], (4, Cout), jnp.float32),
        "betas":  0.1 * jax.random.normal(ks[6], (4, Cout), jnp.float32),
    }

    out = resnet12_block_forward(x, params)
    out = jax.block_until_ready(out)
    assert out.shape == (N, Cout, (H + 1) // 2, (W + 1) // 2), out.shape

    # The kernel uses bf16 MXU operands / bf16 output vs a pure-f32 reference,
    # so bit-exactness isn't expected; 5e-2 (tightened from the previous 1e-1,
    # enabled by the two-pass variance) still catches layout/indexing/mask bugs,
    # which produce O(1) errors on these BN-normalized activations.
    ref = reference_forward(x, params)
    np.testing.assert_allclose(np.asarray(out.astype(jnp.float32)),
                               np.asarray(ref), atol=5e-2, rtol=5e-2)
    print("KERNEL_OK")
</pallas_src>

<mosaic_0001>
module attributes {stable_mosaic.version = 11 : i64} {
  func.func @resnet12_block_kernel(%arg0: i32, %arg1: memref<4x512xbf16, #tpu.memory_space<vmem>>, %arg2: memref<2x512xi32, #tpu.memory_space<vmem>>, %arg3: memref<16x4xbf16, #tpu.memory_space<vmem>>, %arg4: memref<9x8x8xbf16, #tpu.memory_space<vmem>>, %arg5: memref<8x8xbf16, #tpu.memory_space<vmem>>, %arg6: memref<16x4xf32, #tpu.memory_space<vmem>>, %arg7: memref<8x512xbf16, #tpu.memory_space<vmem>>) attributes {dimension_semantics = [#tpu.dimension_semantics<arbitrary>], iteration_bounds = array<i64: 1>, scalar_prefetch = 0 : i64, scratch_operands = 0 : i64, tpu.core_type = #tpu.core_type<tc>, window_params = [{pipeline_mode = #tpu.pipeline_mode<synchronous>, transform_indices = @transform_0, window_bounds = array<i64: 4, 512>}, {pipeline_mode = #tpu.pipeline_mode<synchronous>, transform_indices = @transform_1, window_bounds = array<i64: 2, 512>}, {pipeline_mode = #tpu.pipeline_mode<synchronous>, transform_indices = @transform_2, window_bounds = array<i64: 16, 4>}, {pipeline_mode = #tpu.pipeline_mode<synchronous>, transform_indices = @transform_3, window_bounds = array<i64: 9, 8, 8>}, {pipeline_mode = #tpu.pipeline_mode<synchronous>, transform_indices = @transform_4, window_bounds = array<i64: 8, 8>}, {pipeline_mode = #tpu.pipeline_mode<synchronous>, transform_indices = @transform_5, window_bounds = array<i64: 16, 4>}, {pipeline_mode = #tpu.pipeline_mode<synchronous>, transform_indices = @transform_6, window_bounds = array<i64: 8, 512>}]} {
    %c0 = arith.constant 0 : index
    %c0_0 = arith.constant 0 : index
    %0 = vector.load %arg2[%c0, %c0_0] : memref<2x512xi32, #tpu.memory_space<vmem>>, vector<2x512xi32>
    %1 = vector.extract_strided_slice %0 {offsets = [0, 0], sizes = [1, 512], strides = [1, 1]} : vector<2x512xi32> to vector<1x512xi32>
    %2 = vector.extract_strided_slice %0 {offsets = [1, 0], sizes = [1, 512], strides = [1, 1]} : vector<2x512xi32> to vector<1x512xi32>
    %c0_i32 = arith.constant 0 : i32
    %3 = vector.broadcast %c0_i32 : i32 to vector<1x512xi32>
    %4 = arith.cmpi sgt, %1, %3 : vector<1x512xi32>
    %c15_i32 = arith.constant 15 : i32
    %5 = vector.broadcast %c15_i32 : i32 to vector<1x512xi32>
    %6 = arith.cmpi slt, %1, %5 : vector<1x512xi32>
    %c0_i32_1 = arith.constant 0 : i32
    %7 = vector.broadcast %c0_i32_1 : i32 to vector<1x512xi32>
    %8 = arith.cmpi sgt, %2, %7 : vector<1x512xi32>
    %c15_i32_2 = arith.constant 15 : i32
    %9 = vector.broadcast %c15_i32_2 : i32 to vector<1x512xi32>
    %10 = arith.cmpi slt, %2, %9 : vector<1x512xi32>
    %c0_3 = arith.constant 0 : index
    %c0_4 = arith.constant 0 : index
    %11 = vector.load %arg1[%c0_3, %c0_4] : memref<4x512xbf16, #tpu.memory_space<vmem>>, vector<4x512xbf16>
    %c0_5 = arith.constant 0 : index
    %c0_6 = arith.constant 0 : index
    %12 = vector.load %arg3[%c0_5, %c0_6] : memref<16x4xbf16, #tpu.memory_space<vmem>>, vector<16x4xbf16>
    %cst = arith.constant dense<0.000000e+00> : vector<16x512xf32>
    %13 = tpu.matmul %12, %11, %cst {dimension_numbers = #tpu.dot_dimension_numbers<[1], [0], [0], [1], [0, 0, 1, 1], [], []>} : vector<16x4xbf16>, vector<4x512xbf16>, vector<16x512xf32> -> vector<16x512xf32>
    %c0_7 = arith.constant 0 : index
    %c0_8 = arith.constant 0 : index
    %14 = vector.load %arg6[%c0_7, %c0_8] : memref<16x4xf32, #tpu.memory_space<vmem>>, vector<16x1xf32>
    %c0_9 = arith.constant 0 : index
    %c1 = arith.constant 1 : index
    %15 = vector.load %arg6[%c0_9, %c1] : memref<16x4xf32, #tpu.memory_space<vmem>>, vector<16x1xf32>
    %cst_10 = arith.constant dense<0.000000e+00> : vector<16xf32>
    %16 = vector.multi_reduction <add>, %13, %cst_10 [1] : vector<16x512xf32> to vector<16xf32>
    %17 = vector.shape_cast %16 : vector<16xf32> to vector<16x1xf32>
    %cst_11 = arith.constant 0.001953125 : f32
    %18 = vector.broadcast %cst_11 : f32 to vector<16x1xf32>
    %19 = arith.mulf %17, %18 : vector<16x1xf32>
    %20 = vector.broadcast %19 : vector<16x1xf32> to vector<16x512xf32>
    %21 = arith.subf %13, %20 : vector<16x512xf32>
    %22 = arith.mulf %21, %21 : vector<16x512xf32>
    %cst_12 = arith.constant dense<0.000000e+00> : vector<16xf32>
    %23 = vector.multi_reduction <add>, %22, %cst_12 [1] : vector<16x512xf32> to vector<16xf32>
    %24 = vector.shape_cast %23 : vector<16xf32> to vector<16x1xf32>
    %cst_13 = arith.constant 0.001953125 : f32
    %25 = vector.broadcast %cst_13 : f32 to vector<16x1xf32>
    %26 = arith.mulf %24, %25 : vector<16x1xf32>
    %cst_14 = arith.constant 9.99999974E-6 : f32
    %27 = vector.broadcast %cst_14 : f32 to vector<16x1xf32>
    %28 = arith.addf %26, %27 : vector<16x1xf32>
    %29 = math.rsqrt %28 : vector<16x1xf32>
    %30 = arith.mulf %14, %29 : vector<16x1xf32>
    %31 = vector.broadcast %30 : vector<16x1xf32> to vector<16x512xf32>
    %32 = arith.mulf %21, %31 : vector<16x512xf32>
    %33 = vector.broadcast %15 : vector<16x1xf32> to vector<16x512xf32>
    %34 = arith.addf %32, %33 : vector<16x512xf32>
    %35 = vector.extract_strided_slice %34 {offsets = [0, 0], sizes = [8, 512], strides = [1, 1]} : vector<16x512xf32> to vector<8x512xf32>
    %36 = arith.truncf %35 : vector<8x512xf32> to vector<8x512xbf16>
    %37 = vector.extract_strided_slice %34 {offsets = [8, 0], sizes = [8, 512], strides = [1, 1]} : vector<16x512xf32> to vector<8x512xf32>
    %cst_15 = arith.constant 0.000000e+00 : f32
    %38 = vector.broadcast %cst_15 : f32 to vector<8x512xf32>
    %39 = arith.cmpf ogt, %37, %38 : vector<8x512xf32>
    %cst_16 = arith.constant 2.000000e-01 : f32
    %40 = vector.broadcast %cst_16 : f32 to vector<8x512xf32>
    %41 = arith.mulf %40, %37 : vector<8x512xf32>
    %42 = arith.select %39, %37, %41 : vector<8x512xi1>, vector<8x512xf32>
    %c17_i32 = arith.constant 17 : i32
    %43 = tpu.dynamic_rotate %42 by %c17_i32 dim 1 : vector<8x512xf32>, i32 -> vector<8x512xf32>
    %44 = arith.andi %4, %8 : vector<1x512xi1>
    %cst_17 = arith.constant 0.000000e+00 : f32
    %45 = vector.shape_cast %44 : vector<1x512xi1> to vector<1x512xi1>
    %46 = vector.broadcast %45 : vector<1x512xi1> to vector<8x512xi1>
    %47 = vector.broadcast %cst_17 : f32 to vector<8x512xf32>
    %48 = arith.select %46, %43, %47 : vector<8x512xi1>, vector<8x512xf32>
    %c0_18 = arith.constant 0 : index
    %c0_19 = arith.constant 0 : index
    %c0_20 = arith.constant 0 : index
    %49 = vector.load %arg4[%c0_18, %c0_19, %c0_20] : memref<9x8x8xbf16, #tpu.memory_space<vmem>>, vector<1x8x8xbf16>
    %50 = vector.shape_cast %49 : vector<1x8x8xbf16> to vector<8x8xbf16>
    %51 = arith.truncf %48 : vector<8x512xf32> to vector<8x512xbf16>
    %cst_21 = arith.constant dense<0.000000e+00> : vector<8x512xf32>
    %52 = tpu.matmul %50, %51, %cst_21 {dimension_numbers = #tpu.dot_dimension_numbers<[1], [0], [0], [1], [0, 0, 1, 1], [], []>} : vector<8x8xbf16>, vector<8x512xbf16>, vector<8x512xf32> -> vector<8x512xf32>
    %c16_i32 = arith.constant 16 : i32
    %53 = tpu.dynamic_rotate %42 by %c16_i32 dim 1 : vector<8x512xf32>, i32 -> vector<8x512xf32>
    %cst_22 = arith.constant 0.000000e+00 : f32
    %54 = vector.shape_cast %4 : vector<1x512xi1> to vector<1x512xi1>
    %55 = vector.broadcast %54 : vector<1x512xi1> to vector<8x512xi1>
    %56 = vector.broadcast %cst_22 : f32 to vector<8x512xf32>
    %57 = arith.select %55, %53, %56 : vector<8x512xi1>, vector<8x512xf32>
    %c1_23 = arith.constant 1 : index
    %c0_24 = arith.constant 0 : index
    %c0_25 = arith.constant 0 : index
    %58 = vector.load %arg4[%c1_23, %c0_24, %c0_25] : memref<9x8x8xbf16, #tpu.memory_space<vmem>>, vector<1x8x8xbf16>
    %59 = vector.shape_cast %58 : vector<1x8x8xbf16> to vector<8x8xbf16>
    %60 = arith.truncf %57 : vector<8x512xf32> to vector<8x512xbf16>
    %cst_26 = arith.constant dense<0.000000e+00> : vector<8x512xf32>
    %61 = tpu.matmul %59, %60, %cst_26 {dimension_numbers = #tpu.dot_dimension_numbers<[1], [0], [0], [1], [0, 0, 1, 1], [], []>} : vector<8x8xbf16>, vector<8x512xbf16>, vector<8x512xf32> -> vector<8x512xf32>
    %62 = arith.addf %52, %61 : vector<8x512xf32>
    %c15_i32_27 = arith.constant 15 : i32
    %63 = tpu.dynamic_rotate %42 by %c15_i32_27 dim 1 : vector<8x512xf32>, i32 -> vector<8x512xf32>
    %64 = arith.andi %4, %10 : vector<1x512xi1>
    %cst_28 = arith.constant 0.000000e+00 : f32
    %65 = vector.shape_cast %64 : vector<1x512xi1> to vector<1x512xi1>
    %66 = vector.broadcast %65 : vector<1x512xi1> to vector<8x512xi1>
    %67 = vector.broadcast %cst_28 : f32 to vector<8x512xf32>
    %68 = arith.select %66, %63, %67 : vector<8x512xi1>, vector<8x512xf32>
    %c2 = arith.constant 2 : index
    %c0_29 = arith.constant 0 : index
    %c0_30 = arith.constant 0 : index
    %69 = vector.load %arg4[%c2, %c0_29, %c0_30] : memref<9x8x8xbf16, #tpu.memory_space<vmem>>, vector<1x8x8xbf16>
    %70 = vector.shape_cast %69 : vector<1x8x8xbf16> to vector<8x8xbf16>
    %71 = arith.truncf %68 : vector<8x512xf32> to vector<8x512xbf16>
    %cst_31 = arith.constant dense<0.000000e+00> : vector<8x512xf32>
    %72 = tpu.matmul %70, %71, %cst_31 {dimension_numbers = #tpu.dot_dimension_numbers<[1], [0], [0], [1], [0, 0, 1, 1], [], []>} : vector<8x8xbf16>, vector<8x512xbf16>, vector<8x512xf32> -> vector<8x512xf32>
    %73 = arith.addf %62, %72 : vector<8x512xf32>
    %c1_i32 = arith.constant 1 : i32
    %74 = tpu.dynamic_rotate %42 by %c1_i32 dim 1 : vector<8x512xf32>, i32 -> vector<8x512xf32>
    %cst_32 = arith.constant 0.000000e+00 : f32
    %75 = vector.shape_cast %8 : vector<1x512xi1> to vector<1x512xi1>
    %76 = vector.broadcast %75 : vector<1x512xi1> to vector<8x512xi1>
    %77 = vector.broadcast %cst_32 : f32 to vector<8x512xf32>
    %78 = arith.select %76, %74, %77 : vector<8x512xi1>, vector<8x512xf32>
    %c3 = arith.constant 3 : index
    %c0_33 = arith.constant 0 : index
    %c0_34 = arith.constant 0 : index
    %79 = vector.load %arg4[%c3, %c0_33, %c0_34] : memref<9x8x8xbf16, #tpu.memory_space<vmem>>, vector<1x8x8xbf16>
    %80 = vector.shape_cast %79 : vector<1x8x8xbf16> to vector<8x8xbf16>
    %81 = arith.truncf %78 : vector<8x512xf32> to vector<8x512xbf16>
    %cst_35 = arith.constant dense<0.000000e+00> : vector<8x512xf32>
    %82 = tpu.matmul %80, %81, %cst_35 {dimension_numbers = #tpu.dot_dimension_numbers<[1], [0], [0], [1], [0, 0, 1, 1], [], []>} : vector<8x8xbf16>, vector<8x512xbf16>, vector<8x512xf32> -> vector<8x512xf32>
    %83 = arith.addf %73, %82 : vector<8x512xf32>
    %c4 = arith.constant 4 : index
    %c0_36 = arith.constant 0 : index
    %c0_37 = arith.constant 0 : index
    %84 = vector.load %arg4[%c4, %c0_36, %c0_37] : memref<9x8x8xbf16, #tpu.memory_space<vmem>>, vector<1x8x8xbf16>
    %85 = vector.shape_cast %84 : vector<1x8x8xbf16> to vector<8x8xbf16>
    %86 = arith.truncf %42 : vector<8x512xf32> to vector<8x512xbf16>
    %cst_38 = arith.constant dense<0.000000e+00> : vector<8x512xf32>
    %87 = tpu.matmul %85, %86, %cst_38 {dimension_numbers = #tpu.dot_dimension_numbers<[1], [0], [0], [1], [0, 0, 1, 1], [], []>} : vector<8x8xbf16>, vector<8x512xbf16>, vector<8x512xf32> -> vector<8x512xf32>
    %88 = arith.addf %83, %87 : vector<8x512xf32>
    %c511_i32 = arith.constant 511 : i32
    %89 = tpu.dynamic_rotate %42 by %c511_i32 dim 1 : vector<8x512xf32>, i32 -> vector<8x512xf32>
    %cst_39 = arith.constant 0.000000e+00 : f32
    %90 = vector.shape_cast %10 : vector<1x512xi1> to vector<1x512xi1>
    %91 = vector.broadcast %90 : vector<1x512xi1> to vector<8x512xi1>
    %92 = vector.broadcast %cst_39 : f32 to vector<8x512xf32>
    %93 = arith.select %91, %89, %92 : vector<8x512xi1>, vector<8x512xf32>
    %c5 = arith.constant 5 : index
    %c0_40 = arith.constant 0 : index
    %c0_41 = arith.constant 0 : index
    %94 = vector.load %arg4[%c5, %c0_40, %c0_41] : memref<9x8x8xbf16, #tpu.memory_space<vmem>>, vector<1x8x8xbf16>
    %95 = vector.shape_cast %94 : vector<1x8x8xbf16> to vector<8x8xbf16>
    %96 = arith.truncf %93 : vector<8x512xf32> to vector<8x512xbf16>
    %cst_42 = arith.constant dense<0.000000e+00> : vector<8x512xf32>
    %97 = tpu.matmul %95, %96, %cst_42 {dimension_numbers = #tpu.dot_dimension_numbers<[1], [0], [0], [1], [0, 0, 1, 1], [], []>} : vector<8x8xbf16>, vector<8x512xbf16>, vector<8x512xf32> -> vector<8x512xf32>
    %98 = arith.addf %88, %97 : vector<8x512xf32>
    %c497_i32 = arith.constant 497 : i32
    %99 = tpu.dynamic_rotate %42 by %c497_i32 dim 1 : vector<8x512xf32>, i32 -> vector<8x512xf32>
    %100 = arith.andi %6, %8 : vector<1x512xi1>
    %cst_43 = arith.constant 0.000000e+00 : f32
    %101 = vector.shape_cast %100 : vector<1x512xi1> to vector<1x512xi1>
    %102 = vector.broadcast %101 : vector<1x512xi1> to vector<8x512xi1>
    %103 = vector.broadcast %cst_43 : f32 to vector<8x512xf32>
    %104 = arith.select %102, %99, %103 : vector<8x512xi1>, vector<8x512xf32>
    %c6 = arith.constant 6 : index
    %c0_44 = arith.constant 0 : index
    %c0_45 = arith.constant 0 : index
    %105 = vector.load %arg4[%c6, %c0_44, %c0_45] : memref<9x8x8xbf16, #tpu.memory_space<vmem>>, vector<1x8x8xbf16>
    %106 = vector.shape_cast %105 : vector<1x8x8xbf16> to vector<8x8xbf16>
    %107 = arith.truncf %104 : vector<8x512xf32> to vector<8x512xbf16>
    %cst_46 = arith.constant dense<0.000000e+00> : vector<8x512xf32>
    %108 = tpu.matmul %106, %107, %cst_46 {dimension_numbers = #tpu.dot_dimension_numbers<[1], [0], [0], [1], [0, 0, 1, 1], [], []>} : vector<8x8xbf16>, vector<8x512xbf16>, vector<8x512xf32> -> vector<8x512xf32>
    %109 = arith.addf %98, %108 : vector<8x512xf32>
    %c496_i32 = arith.constant 496 : i32
    %110 = tpu.dynamic_rotate %42 by %c496_i32 dim 1 : vector<8x512xf32>, i32 -> vector<8x512xf32>
    %cst_47 = arith.constant 0.000000e+00 : f32
    %111 = vector.shape_cast %6 : vector<1x512xi1> to vector<1x512xi1>
    %112 = vector.broadcast %111 : vector<1x512xi1> to vector<8x512xi1>
    %113 = vector.broadcast %cst_47 : f32 to vector<8x512xf32>
    %114 = arith.select %112, %110, %113 : vector<8x512xi1>, vector<8x512xf32>
    %c7 = arith.constant 7 : index
    %c0_48 = arith.constant 0 : index
    %c0_49 = arith.constant 0 : index
    %115 = vector.load %arg4[%c7, %c0_48, %c0_49] : memref<9x8x8xbf16, #tpu.memory_space<vmem>>, vector<1x8x8xbf16>
    %116 = vector.shape_cast %115 : vector<1x8x8xbf16> to vector<8x8xbf16>
    %117 = arith.truncf %114 : vector<8x512xf32> to vector<8x512xbf16>
    %cst_50 = arith.constant dense<0.000000e+00> : vector<8x512xf32>
    %118 = tpu.matmul %116, %117, %cst_50 {dimension_numbers = #tpu.dot_dimension_numbers<[1], [0], [0], [1], [0, 0, 1, 1], [], []>} : vector<8x8xbf16>, vector<8x512xbf16>, vector<8x512xf32> -> vector<8x512xf32>
    %119 = arith.addf %109, %118 : vector<8x512xf32>
    %c495_i32 = arith.constant 495 : i32
    %120 = tpu.dynamic_rotate %42 by %c495_i32 dim 1 : vector<8x512xf32>, i32 -> vector<8x512xf32>
    %121 = arith.andi %6, %10 : vector<1x512xi1>
    %cst_51 = arith.constant 0.000000e+00 : f32
    %122 = vector.shape_cast %121 : vector<1x512xi1> to vector<1x512xi1>
    %123 = vector.broadcast %122 : vector<1x512xi1> to vector<8x512xi1>
    %124 = vector.broadcast %cst_51 : f32 to vector<8x512xf32>
    %125 = arith.select %123, %120, %124 : vector<8x512xi1>, vector<8x512xf32>
    %c8 = arith.constant 8 : index
    %c0_52 = arith.constant 0 : index
    %c0_53 = arith.constant 0 : index
    %126 = vector.load %arg4[%c8, %c0_52, %c0_53] : memref<9x8x8xbf16, #tpu.memory_space<vmem>>, vector<1x8x8xbf16>
    %127 = vector.shape_cast %126 : vector<1x8x8xbf16> to vector<8x8xbf16>
    %128 = arith.truncf %125 : vector<8x512xf32> to vector<8x512xbf16>
    %cst_54 = arith.constant dense<0.000000e+00> : vector<8x512xf32>
    %129 = tpu.matmul %127, %128, %cst_54 {dimension_numbers = #tpu.dot_dimension_numbers<[1], [0], [0], [1], [0, 0, 1, 1], [], []>} : vector<8x8xbf16>, vector<8x512xbf16>, vector<8x512xf32> -> vector<8x512xf32>
    %130 = arith.addf %119, %129 : vector<8x512xf32>
    %c0_55 = arith.constant 0 : index
    %c2_56 = arith.constant 2 : index
    %131 = vector.load %arg6[%c0_55, %c2_56] : memref<16x4xf32, #tpu.memory_space<vmem>>, vector<8x1xf32>
    %c0_57 = arith.constant 0 : index
    %c3_58 = arith.constant 3 : index
    %132 = vector.load %arg6[%c0_57, %c3_58] : memref<16x4xf32, #tpu.memory_space<vmem>>, vector<8x1xf32>
    %cst_59 = arith.constant dense<0.000000e+00> : vector<8xf32>
    %133 = vector.multi_reduction <add>, %130, %cst_59 [1] : vector<8x512xf32> to vector<8xf32>
    %134 = vector.shape_cast %133 : vector<8xf32> to vector<8x1xf32>
    %cst_60 = arith.constant 0.001953125 : f32
    %135 = vector.broadcast %cst_60 : f32 to vector<8x1xf32>
    %136 = arith.mulf %134, %135 : vector<8x1xf32>
    %137 = vector.broadcast %136 : vector<8x1xf32> to vector<8x512xf32>
    %138 = arith.subf %130, %137 : vector<8x512xf32>
    %139 = arith.mulf %138, %138 : vector<8x512xf32>
    %cst_61 = arith.constant dense<0.000000e+00> : vector<8xf32>
    %140 = vector.multi_reduction <add>, %139, %cst_61 [1] : vector<8x512xf32> to vector<8xf32>
    %141 = vector.shape_cast %140 : vector<8xf32> to vector<8x1xf32>
    %cst_62 = arith.constant 0.001953125 : f32
    %142 = vector.broadcast %cst_62 : f32 to vector<8x1xf32>
    %143 = arith.mulf %141, %142 : vector<8x1xf32>
    %cst_63 = arith.constant 9.99999974E-6 : f32
    %144 = vector.broadcast %cst_63 : f32 to vector<8x1xf32>
    %145 = arith.addf %143, %144 : vector<8x1xf32>
    %146 = math.rsqrt %145 : vector<8x1xf32>
    %147 = arith.mulf %131, %146 : vector<8x1xf32>
    %148 = vector.broadcast %147 : vector<8x1xf32> to vector<8x512xf32>
    %149 = arith.mulf %138, %148 : vector<8x512xf32>
    %150 = vector.broadcast %132 : vector<8x1xf32> to vector<8x512xf32>
    %151 = arith.addf %149, %150 : vector<8x512xf32>
    %cst_64 = arith.constant 0.000000e+00 : f32
    %152 = vector.broadcast %cst_64 : f32 to vector<8x512xf32>
    %153 = arith.cmpf ogt, %151, %152 : vector<8x512xf32>
    %cst_65 = arith.constant 2.000000e-01 : f32
    %154 = vector.broadcast %cst_65 : f32 to vector<8x512xf32>
    %155 = arith.mulf %154, %151 : vector<8x512xf32>
    %156 = arith.select %153, %151, %155 : vector<8x512xi1>, vector<8x512xf32>
    %c0_66 = arith.constant 0 : index
    %c0_67 = arith.constant 0 : index
    %157 = vector.load %arg5[%c0_66, %c0_67] : memref<8x8xbf16, #tpu.memory_space<vmem>>, vector<8x8xbf16>
    %158 = arith.truncf %156 : vector<8x512xf32> to vector<8x512xbf16>
    %cst_68 = arith.constant dense<0.000000e+00> : vector<8x512xf32>
    %159 = tpu.matmul %157, %158, %cst_68 {dimension_numbers = #tpu.dot_dimension_numbers<[1], [0], [0], [1], [0, 0, 1, 1], [], []>} : vector<8x8xbf16>, vector<8x512xbf16>, vector<8x512xf32> -> vector<8x512xf32>
    %c8_69 = arith.constant 8 : index
    %c2_70 = arith.constant 2 : index
    %160 = vector.load %arg6[%c8_69, %c2_70] : memref<16x4xf32, #tpu.memory_space<vmem>>, vector<8x1xf32>
    %c8_71 = arith.constant 8 : index
    %c3_72 = arith.constant 3 : index
    %161 = vector.load %arg6[%c8_71, %c3_72] : memref<16x4xf32, #tpu.memory_space<vmem>>, vector<8x1xf32>
    %cst_73 = arith.constant dense<0.000000e+00> : vector<8xf32>
    %162 = vector.multi_reduction <add>, %159, %cst_73 [1] : vector<8x512xf32> to vector<8xf32>
    %163 = vector.shape_cast %162 : vector<8xf32> to vector<8x1xf32>
    %cst_74 = arith.constant 0.001953125 : f32
    %164 = vector.broadcast %cst_74 : f32 to vector<8x1xf32>
    %165 = arith.mulf %163, %164 : vector<8x1xf32>
    %166 = vector.broadcast %165 : vector<8x1xf32> to vector<8x512xf32>
    %167 = arith.subf %159, %166 : vector<8x512xf32>
    %168 = arith.mulf %167, %167 : vector<8x512xf32>
    %cst_75 = arith.constant dense<0.000000e+00> : vector<8xf32>
    %169 = vector.multi_reduction <add>, %168, %cst_75 [1] : vector<8x512xf32> to vector<8xf32>
    %170 = vector.shape_cast %169 : vector<8xf32> to vector<8x1xf32>
    %cst_76 = arith.constant 0.001953125 : f32
    %171 = vector.broadcast %cst_76 : f32 to vector<8x1xf32>
    %172 = arith.mulf %170, %171 : vector<8x1xf32>
    %cst_77 = arith.constant 9.99999974E-6 : f32
    %173 = vector.broadcast %cst_77 : f32 to vector<8x1xf32>
    %174 = arith.addf %172, %173 : vector<8x1xf32>
    %175 = math.rsqrt %174 : vector<8x1xf32>
    %176 = arith.mulf %160, %175 : vector<8x1xf32>
    %177 = vector.broadcast %176 : vector<8x1xf32> to vector<8x512xf32>
    %178 = arith.mulf %167, %177 : vector<8x512xf32>
    %179 = vector.broadcast %161 : vector<8x1xf32> to vector<8x512xf32>
    %180 = arith.addf %178, %179 : vector<8x512xf32>
    %181 = arith.extf %36 : vector<8x512xbf16> to vector<8x512xf32>
    %182 = arith.addf %180, %181 : vector<8x512xf32>
    %cst_78 = arith.constant 0.000000e+00 : f32
    %183 = vector.broadcast %cst_78 : f32 to vector<8x512xf32>
    %184 = arith.cmpf ogt, %182, %183 : vector<8x512xf32>
    %cst_79 = arith.constant 2.000000e-01 : f32
    %185 = vector.broadcast %cst_79 : f32 to vector<8x512xf32>
    %186 = arith.mulf %185, %182 : vector<8x512xf32>
    %187 = arith.select %184, %182, %186 : vector<8x512xi1>, vector<8x512xf32>
    %c1_i32_80 = arith.constant 1 : i32
    %188 = tpu.dynamic_rotate %187 by %c1_i32_80 dim 1 : vector<8x512xf32>, i32 -> vector<8x512xf32>
    %cst_81 = arith.constant 0xFF800000 : f32
    %189 = vector.shape_cast %8 : vector<1x512xi1> to vector<1x512xi1>
    %190 = vector.broadcast %189 : vector<1x512xi1> to vector<8x512xi1>
    %191 = vector.broadcast %cst_81 : f32 to vector<8x512xf32>
    %192 = arith.select %190, %188, %191 : vector<8x512xi1>, vector<8x512xf32>
    %193 = arith.maximumf %187, %192 : vector<8x512xf32>
    %c511_i32_82 = arith.constant 511 : i32
    %194 = tpu.dynamic_rotate %187 by %c511_i32_82 dim 1 : vector<8x512xf32>, i32 -> vector<8x512xf32>
    %cst_83 = arith.constant 0xFF800000 : f32
    %195 = vector.shape_cast %10 : vector<1x512xi1> to vector<1x512xi1>
    %196 = vector.broadcast %195 : vector<1x512xi1> to vector<8x512xi1>
    %197 = vector.broadcast %cst_83 : f32 to vector<8x512xf32>
    %198 = arith.select %196, %194, %197 : vector<8x512xi1>, vector<8x512xf32>
    %199 = arith.maximumf %193, %198 : vector<8x512xf32>
    %c16_i32_84 = arith.constant 16 : i32
    %200 = tpu.dynamic_rotate %199 by %c16_i32_84 dim 1 : vector<8x512xf32>, i32 -> vector<8x512xf32>
    %cst_85 = arith.constant 0xFF800000 : f32
    %201 = vector.shape_cast %4 : vector<1x512xi1> to vector<1x512xi1>
    %202 = vector.broadcast %201 : vector<1x512xi1> to vector<8x512xi1>
    %203 = vector.broadcast %cst_85 : f32 to vector<8x512xf32>
    %204 = arith.select %202, %200, %203 : vector<8x512xi1>, vector<8x512xf32>
    %205 = arith.maximumf %199, %204 : vector<8x512xf32>
    %c496_i32_86 = arith.constant 496 : i32
    %206 = tpu.dynamic_rotate %199 by %c496_i32_86 dim 1 : vector<8x512xf32>, i32 -> vector<8x512xf32>
    %cst_87 = arith.constant 0xFF800000 : f32
    %207 = vector.shape_cast %6 : vector<1x512xi1> to vector<1x512xi1>
    %208 = vector.broadcast %207 : vector<1x512xi1> to vector<8x512xi1>
    %209 = vector.broadcast %cst_87 : f32 to vector<8x512xf32>
    %210 = arith.select %208, %206, %209 : vector<8x512xi1>, vector<8x512xf32>
    %211 = arith.maximumf %205, %210 : vector<8x512xf32>
    %212 = arith.truncf %211 : vector<8x512xf32> to vector<8x512xbf16>
    %c0_88 = arith.constant 0 : index
    %c0_89 = arith.constant 0 : index
    %213 = vector.load %arg7[%c0_88, %c0_89] : memref<8x512xbf16, #tpu.memory_space<vmem>>, vector<8x512xbf16>
    tpu.vector_store %arg7[%c0_88, %c0_89], %212 {strides = array<i32>} : memref<8x512xbf16, #tpu.memory_space<vmem>>, vector<8x512xbf16>,
    return
  }
  func.func @transform_0(%arg0: i32) -> (i32, i32) {
    %c0_i32 = arith.constant 0 : i32
    %c0_i32_0 = arith.constant 0 : i32
    %c0_i32_1 = arith.constant 0 : i32
    return %c0_i32, %c0_i32_0 : i32, i32
  }
  func.func @transform_1(%arg0: i32) -> (i32, i32) {
    %c0_i32 = arith.constant 0 : i32
    %c0_i32_0 = arith.constant 0 : i32
    %c0_i32_1 = arith.constant 0 : i32
    return %c0_i32, %c0_i32_0 : i32, i32
  }
  func.func @transform_2(%arg0: i32) -> (i32, i32) {
    %c0_i32 = arith.constant 0 : i32
    %c0_i32_0 = arith.constant 0 : i32
    %c0_i32_1 = arith.constant 0 : i32
    return %c0_i32, %c0_i32_0 : i32, i32
  }
  func.func @transform_3(%arg0: i32) -> (i32, i32, i32) {
    %c0_i32 = arith.constant 0 : i32
    %c0_i32_0 = arith.constant 0 : i32
    %c0_i32_1 = arith.constant 0 : i32
    %c0_i32_2 = arith.constant 0 : i32
    return %c0_i32, %c0_i32_0, %c0_i32_1 : i32, i32, i32
  }
  func.func @transform_4(%arg0: i32) -> (i32, i32) {
    %c0_i32 = arith.constant 0 : i32
    %c0_i32_0 = arith.constant 0 : i32
    %c0_i32_1 = arith.constant 0 : i32
    return %c0_i32, %c0_i32_0 : i32, i32
  }
  func.func @transform_5(%arg0: i32) -> (i32, i32) {
    %c0_i32 = arith.constant 0 : i32
    %c0_i32_0 = arith.constant 0 : i32
    %c0_i32_1 = arith.constant 0 : i32
    return %c0_i32, %c0_i32_0 : i32, i32
  }
  func.func @transform_6(%arg0: i32) -> (i32, i32) {
    %c0_i32 = arith.constant 0 : i32
    %c0_i32_0 = arith.constant 0 : i32
    %c0_i32_1 = arith.constant 0 : i32
    return %c0_i32, %c0_i32_0 : i32, i32
  }
}

</mosaic_0001>

<bundles_post_ra>
// kernel: tpu_custom_call.1
= control target key start
LH: loop header
LB: loop body
LE: loop exit
PB: predicated region body
PF: predicated region fallthrough
CT: control target
= control target key end

     0   :  { %11 = vsyncpa [#allocation3], 0  ;;  %s3323_s0 = inlined_call_operand.hbm [shape: bf16[4,512], index: 0, kind: input, shape index: {}]   ;;  %s3324_s1 = inlined_call_operand.hbm [shape: s32[2,512], index: 1, kind: input, shape index: {}]   ;;  %s3325_s2 = inlined_call_operand.hbm [shape: bf16[16,4], index: 2, kind: input, shape index: {}]   ;;  %s3326_s3 = inlined_call_operand.hbm [shape: bf16[9,8,8], index: 3, kind: input, shape index: {}]   ;;  %s3327_s4 = inlined_call_operand.hbm [shape: bf16[8,8], index: 4, kind: input, shape index: {}]   ;;  %s3328_s5 = inlined_call_operand.hbm [shape: f32[16,4], index: 5, kind: input, shape index: {}]   ;;  %s3329_s6 = inlined_call_operand.hbm [shape: bf16[8,512], index: 6, kind: output, shape index: {}]  }
   0x1   :  { %12 = vsyncpa [#allocation6], 0 }
   0x2   :  { %13 = vsyncpa [#allocation9], 0 }
   0x3   :  { %14 = vsyncpa [#allocation12], 0 }
   0x4   :  { %15 = vsyncpa [#allocation4], 0  ;;  %s2466_s21 = smov [#allocation5]   ;;  %s2302_s25 = scalar_lea.hbm %s3324_s1, 128 }
   0x5   :  { %s32_s22 = sshll.u32 %s2466_s21, 4  ;;  %p2303_p0 = scmp.ne.s32.totalorder %s3324_s1, %s2302_s25  ;;  %s33_s22 = int_to_ptr.vmem [resolvable:$true] %s32_s22 }
   0x6   :  { %p2306_p1 = scmp.lt.u32.totalorder %s2302_s25, %s3324_s1 }
   0x8   :  { %p2308_p2 = pnand %p2306_p1, %p2303_p0 }
   0xa   :  { %2311 = shalt.err (!%p2308_p2)
}
   0xb   :  { %s2312_s30 = scalar_lea.vmem %s33_s22, 128  ;;  %p2317_p4 = scmp.lt.s32.totalorder %s33_s22, %s33_s22 }
   0xc   :  { %p2313_p3 = scmp.ne.s32.totalorder %s33_s22, %s2312_s30  ;;  %p2318_p5 = scmp.lt.s32.totalorder %s2312_s30, %s2312_s30 }
   0xe   :  { %p2319_p6 = por %p2318_p5, %p2317_p4 }
  0x10   :  { %p2320_p7 = pnand %p2319_p6, %p2313_p3 }
  0x12   :  { %2323 = shalt.err (!%p2320_p7)
}
  0x13   :  { %35 = dma.hbm_to_vmem [thread:$0]  %s3324_s1, 128, %s33_s22, [#allocation6]  }
  0x14   :  { %s2467_s9 = smov [#allocation8]   ;;  %s2468_s11 = smov [#allocation2]  }
  0x15   :  { %s53_s10 = sshll.u32 %s2467_s9, 4  ;;  %s22_s12 = sshll.u32 %s2468_s11, 4  ;;  %s54_s10 = int_to_ptr.vmem [resolvable:$true] %s53_s10  ;;  %s23_s12 = int_to_ptr.vmem [resolvable:$true] %s22_s12 }
  0x16   :  { %s2324_s15 = scalar_lea.hbm %s3326_s3, 576 }
  0x17   :  { %p2325_p8 = scmp.ne.s32.totalorder %s3326_s3, %s2324_s15  ;;  %p2328_p9 = scmp.lt.u32.totalorder %s2324_s15, %s3326_s3 }
  0x19   :  { %p2330_p10 = pnand %p2328_p9, %p2325_p8 }
  0x1b   :  { %2333 = shalt.err (!%p2330_p10)
}
  0x1c   :  { %s2334_s1 = scalar_lea.vmem %s54_s10, 576  ;;  %p2339_p12 = scmp.lt.s32.totalorder %s54_s10, %s54_s10 }
  0x1d   :  { %p2335_p11 = scmp.ne.s32.totalorder %s54_s10, %s2334_s1  ;;  %p2340_p13 = scmp.lt.s32.totalorder %s2334_s1, %s2334_s1 }
  0x1f   :  { %p2341_p0 = por %p2340_p13, %p2339_p12 }
  0x21   :  { %p2342_p1 = pnand %p2341_p0, %p2335_p11 }
  0x23   :  { %2345 = shalt.err (!%p2342_p1)
}
  0x24   :  { %s2469_s20 = smov 64   ;;  %s2470_s21 = smov 4  }
  0x25   :  { %59 = dma.hbm_to_vmem [thread:$0]  %s3326_s3, 576, %s54_s10, [#allocation9], %s2469_s20, %s2469_s20, %s2470_s21  }
  0x26   :  { %s2346_s26 = scalar_lea.hbm %s3323_s0, 128 }
  0x27   :  { %p2347_p2 = scmp.ne.s32.totalorder %s3323_s0, %s2346_s26  ;;  %p2350_p3 = scmp.lt.u32.totalorder %s2346_s26, %s3323_s0 }
  0x29   :  { %p2352_p4 = pnand %p2350_p3, %p2347_p2 }
  0x2b   :  { %2355 = shalt.err (!%p2352_p4)
}
  0x2c   :  { %s2356_s7 = scalar_lea.vmem %s23_s12, 128  ;;  %p2361_p6 = scmp.lt.s32.totalorder %s23_s12, %s23_s12 }
  0x2d   :  { %p2357_p5 = scmp.ne.s32.totalorder %s23_s12, %s2356_s7  ;;  %p2362_p7 = scmp.lt.s32.totalorder %s2356_s7, %s2356_s7 }
  0x2f   :  { %p2363_p8 = por %p2362_p7, %p2361_p6 }
  0x31   :  { %p2364_p9 = pnand %p2363_p8, %p2357_p5 }
  0x33   :  { %2367 = shalt.err (!%p2364_p9)
}
  0x34   :  { %25 = dma.hbm_to_vmem [thread:$0]  %s3323_s0, 128, %s23_s12, [#allocation3]  }
  0x35   :  { %s2471_s9 = smov [#allocation7]   ;;  %s2472_s11 = smov [#allocation10]  }
  0x36   :  { %s41_s10 = sshll.u32 %s2471_s9, 4  ;;  %s66_s13 = sshll.u32 %s2472_s11, 4  ;;  %s42_s10 = int_to_ptr.vmem [resolvable:$true] %s41_s10  ;;  %s67_s13 = int_to_ptr.vmem [resolvable:$true] %s66_s13 }
  0x37   :  { %s2368_s16 = scalar_lea.hbm %s3325_s2, 128 }
  0x38   :  { %p2369_p10 = scmp.ne.s32.totalorder %s3325_s2, %s2368_s16  ;;  %p2372_p11 = scmp.lt.u32.totalorder %s2368_s16, %s3325_s2 }
  0x3a   :  { %p2374_p12 = pnand %p2372_p11, %p2369_p10 }
  0x3c   :  { %2377 = shalt.err (!%p2374_p12)
}
  0x3d   :  { %s2378_s0 = scalar_lea.vmem %s42_s10, 128  ;;  %p2383_p0 = scmp.lt.s32.totalorder %s42_s10, %s42_s10 }
  0x3e   :  { %p2379_p13 = scmp.ne.s32.totalorder %s42_s10, %s2378_s0  ;;  %p2384_p1 = scmp.lt.s32.totalorder %s2378_s0, %s2378_s0 }
  0x40   :  { %p2385_p2 = por %p2384_p1, %p2383_p0 }
  0x42   :  { %p2386_p3 = pnand %p2385_p2, %p2379_p13 }
  0x44   :  { %2389 = shalt.err (!%p2386_p3)
}
  0x45   :  { %47 = dma.hbm_to_vmem [thread:$0]  %s3325_s2, 128, %s42_s10, [#allocation6], %s2469_s20, %s2469_s20, %s2470_s21  }
  0x46   :  { %s2390_s25 = scalar_lea.hbm %s3327_s4, 64 }
  0x47   :  { %p2391_p4 = scmp.ne.s32.totalorder %s3327_s4, %s2390_s25  ;;  %p2394_p5 = scmp.lt.u32.totalorder %s2390_s25, %s3327_s4 }
  0x49   :  { %p2396_p6 = pnand %p2394_p5, %p2391_p4 }
  0x4b   :  { %2399 = shalt.err (!%p2396_p6)
}
  0x4c   :  { %s2400_s30 = scalar_lea.vmem %s67_s13, 64  ;;  %p2405_p8 = scmp.lt.s32.totalorder %s67_s13, %s67_s13 }
  0x4d   :  { %p2401_p7 = scmp.ne.s32.totalorder %s67_s13, %s2400_s30  ;;  %p2406_p9 = scmp.lt.s32.totalorder %s2400_s30, %s2400_s30 }
  0x4f   :  { %p2407_p10 = por %p2406_p9, %p2405_p8 }
  0x51   :  { %p2408_p11 = pnand %p2407_p10, %p2401_p7 }
  0x53   :  { %2411 = shalt.err (!%p2408_p11)
}
  0x54   :  { %69 = dma.hbm_to_vmem [thread:$0]  %s3327_s4, 64, %s67_s13, [#allocation9]  }
  0x55   :  { %s2473_s21 = smov [#allocation11]   ;;  %s2412_s9 = scalar_lea.hbm %s3328_s5, 256 }
  0x56   :  { %s75_s7 = sshll.u32 %s2473_s21, 4  ;;  %p2413_p12 = scmp.ne.s32.totalorder %s3328_s5, %s2412_s9  ;;  %s76_s7 = int_to_ptr.vmem [resolvable:$true] %s75_s7 }
  0x57   :  { %p2416_p13 = scmp.lt.u32.totalorder %s2412_s9, %s3328_s5 }
  0x59   :  { %p2418_p0 = pnand %p2416_p13, %p2413_p12 }
  0x5b   :  { %2421 = shalt.err (!%p2418_p0)
}
  0x5c   :  { %s2422_s16 = scalar_lea.vmem %s76_s7, 256  ;;  %p2427_p2 = scmp.lt.s32.totalorder %s76_s7, %s76_s7 }
  0x5d   :  { %p2423_p1 = scmp.ne.s32.totalorder %s76_s7, %s2422_s16  ;;  %p2428_p3 = scmp.lt.s32.totalorder %s2422_s16, %s2422_s16 }
  0x5f   :  { %p2429_p4 = por %p2428_p3, %p2427_p2 }
  0x61   :  { %p2430_p5 = pnand %p2429_p4, %p2423_p1 }
  0x63   :  { %2433 = shalt.err (!%p2430_p5)
}
  0x64   :  { %s2474_s4 = smov 128   ;;  %s2475_s13 = smov 8  }
  0x65   :  { %81 = dma.hbm_to_vmem [thread:$0]  %s3328_s5, 256, %s76_s7, [#allocation12], %s2474_s4, %s2474_s4, %s2475_s13  }
  0x66   :  { %2456 = dma.done.wait [#allocation3], 128  }
  0x67   :  { %2457 = vsyncadd [#allocation3], 4294967168 }
  0x68   :  { %2458 = dma.done.wait [#allocation6], 256  }
  0x69   :  { %2459 = vsyncadd [#allocation6], 4294967040 }
  0x6a   :  { %2460 = dma.done.wait [#allocation9], 640  }
  0x6b   :  { %2461 = vsyncadd [#allocation9], 4294966656 }
  0x6c   :  { %2462 = dma.done.wait [#allocation12], 256  }
  0x6d   :  { %2463 = vsyncadd [#allocation12], 4294967040  ;;  %v117_v0 = vlaneseq  ;;  %v2476_v1 = vmov 1983009808   ;;  %v2477_v3 = vmov 0   ;;  %v104_v7 = vld [vmem:[#allocation2] sm:$0xff] }
  0x6e   :  { %v115_v2 = vunpack.c.l.s4 %v2476_v1  ;;  %179 = vmatprep.mubr.bf16.mxu0 %v2477_v3  ;;  %222 = vmatprep.mubr.bf16.mxu1 %v2477_v3  ;;  %vm134_vm0 = vcmask 1041408   ;;  %v113_v9 = vcombine.high %v104_v7, %v104_v7  ;;  %v2292_v15 = vld [vmem:[#allocation7] sm:$0xff]   ;;  %vm130_vm1 = vcmask 31744   ;;  %v234_v46 = vld [vmem:[#allocation11 + $0x8] sm:$0xff]  ;;  %s2479_s5 = smov 16   ;;  %s2480_s19 = smov 15  }
  0x6f   :  { %v2606_v4 = vshrl.u32 %v117_v0, 7  ;;  %2202 = vset.pattern.permute.xlu1 %v2477_v3  ;;  %v3333_v49 = vmov 1   ;;  %s2481_s1 = smov 17   ;;  %s2482_s0 = smov 1   ;;  %vm462_vm13 = vcmask 1043456  }
  0x70   :  { %v116_v5 = vunpack.c.0.s8 %v115_v2  ;;  %s2483_s12 = smov 127   ;;  %s2484_s22 = smov 113  }
  0x71   :  { %s2485_s23 = smov 112   ;;  %s2486_s24 = smov 111  }
  0x72   :  { %v119_v6 = vsub.s32 %v116_v5, %v2606_v4  ;;  %s2489_s25 = smov [#allocation13]  }
  0x73   :  { %s2051_s26 = sshll.u32 %s2489_s25, 4  ;;  %s2052_s26 = int_to_ptr.vmem [resolvable:$true] %s2051_s26 }
  0x74   :  { %v120_v8 = vrot.slane %v104_v7, %v119_v6  ;;  %v127_v12 = vrot.slane %v113_v9, %v119_v6  ;;  %s2434_s27 = scalar_lea.vmem %s2052_s26, 256  ;;  %p2439_p7 = scmp.lt.s32.totalorder %s2052_s26, %s2052_s26 }
  0x75   :  { %p2435_p6 = scmp.ne.s32.totalorder %s2052_s26, %s2434_s27  ;;  %p2440_p8 = scmp.lt.s32.totalorder %s2434_s27, %s2434_s27 }
  0x76   :  { %v128_v10 = vcombine.high %v120_v8, %v120_v8  ;;  %v136_v11 = vsel %vm134_vm0, %v120_v8, 0  ;;  %v129_v13 = vcombine.high %v127_v12, %v127_v12  ;;  %v142_v14 = vsel %vm134_vm0, %v127_v12, 0  ;;  %v2646_v8 = vld [vmem:[#allocation5] sm:$0xff] }
  0x77   :  { %vm103_vm6 = vcmp.lt.s32.totalorder %v2646_v8, 15  ;;  %vm102_vm7 = vcmp.gt.s32.totalorder %v2646_v8, 0  ;;  %p2441_p9 = por %p2440_p8, %p2439_p7 }
  0x78   :  { %2064 = vmatprep.subr.msk.bf16.mxu0 %vm134_vm0, %v128_v10  ;;  %2066 = vmatprep.subr.msk.bf16.mxu1 %vm134_vm0, %v129_v13  ;;  %v2655_v9 = vsel %vm103_vm6, 1, %v2477_v3 }
  0x79   :  { %148 = vmatpush1.bf16.msra.mxu0 %v136_v11  ;;  %191 = vmatpush1.bf16.msra.mxu1 %v142_v14  ;;  %v2077_v10 = vrot.slane %v2655_v9, 9  ;;  %v2665_v11 = vsel %vm102_vm7, 1, %v2477_v3  ;;  %v2681_v14 = vsub.s32 6, %v2606_v4  ;;  %p2442_p10 = pnand %p2441_p9, %p2435_p6 }
  0x7a   :  { %v2068_v13 = vrot.slane %v2665_v11, 9 }
  0x7b   :  { %vm2670_vm8 = vcmp.ne.s32.totalorder %v2077_v10, 0 }
  0x7c   :  { %2065 = vmatmul.mubr.msk.bf16.vlgmr.msra.gmra.mrb[0].mxu0 %vm130_vm1, %v2292_v15  ;;  %2067 = vmatmul.mubr.msk.bf16.vlgmr.msra.gmra.mrb[0].mxu1 %vm130_vm1, %v2292_v15  ;;  %vm1582_vm9 = vmand %vm103_vm6, %vm2670_vm8  ;;  %vm2691_vm10 = vcmp.ne.s32.totalorder %v2068_v13, 0 }
  0x7d   :  { %507 = vmatprep.mubr.bf16.mxu0 %v2477_v3  ;;  %548 = vmatprep.mubr.bf16.mxu1 %v2477_v3  ;;  %v2686_v15 = vsel %vm1582_vm9, 1, %v2477_v3  ;;  %vm1260_vm11 = vmand %vm103_vm6, %vm2691_vm10 }
  0x7e   :  { %vm352_vm12 = vmand %vm102_vm7, %vm2691_vm10 }
 0x14f   :  { %v2612_v16 = vpop.f32.mrb[0].mxu0  ;;  %v2618_v20 = vpop.f32.mrb[0].mxu1 }
 0x150   :  { %v2614_v17 = vpop.f32.mrb[1].mxu0  ;;  %v2620_v22 = vpop.f32.mrb[1].mxu1 }
 0x151   :  { %v235_v18 = vadd.f32 %v2614_v17, %v2612_v16  ;;  %v185_v19 = vpop.f32.mrb[2].mxu0  ;;  %v228_v25 = vpop.f32.mrb[2].mxu1 }
 0x152   :  { %v187_v21 = vpop.f32.mrb[3].mxu0  ;;  %v230_v26 = vpop.f32.mrb[3].mxu1 }
 0x153   :  { %v236_v23 = vadd.f32 %v235_v18, %v2618_v20  ;;  %v240_v24 = vadd.f32 %v187_v21, %v185_v19  ;;  %v2689_v18 = vsub.s32 0, %v2606_v4 }
 0x155   :  { %v241_v27 = vadd.f32 %v240_v24, %v228_v25  ;;  %v2624_v28 = vadd.f32 %v236_v23, %v2620_v22  ;;  %v2708_v24 = vsub.s32 4, %v2606_v4 }
 0x157   :  { %v242_v29 = vadd.f32 %v241_v27, %v230_v26 }
 0x159   :  { %243 = vadd.xlane.f32.xlu0 %v242_v29  ;;  %v2723_v29 = vsub.s32 2, %v2606_v4 }
 0x1e6   :  { %v244_v30 = vpop.xlane.xlu0 %243 }
 0x1e7   :  { %v246_v31 = vmul.f32 0.001953125, %v244_v30  ;;  %v1429_v30 = vrot.slane %v2655_v9, %v2723_v29 }
 0x1e9   :  { %v251_v32 = vsub.f32 %v185_v19, %v246_v31  ;;  %v252_v33 = vsub.f32 %v187_v21, %v246_v31  ;;  %v253_v34 = vsub.f32 %v228_v25, %v246_v31  ;;  %v254_v35 = vsub.f32 %v230_v26, %v246_v31 }
 0x1ea   :  { %v1599_v21 = vrot.slane %v2686_v15, %v2681_v14  ;;  %v2711_v25 = vsel %vm1260_vm11, 1, %v2477_v3  ;;  %v2731_v31 = vrot.slane %v1429_v30, %v2689_v18 }
 0x1eb   :  { %v259_v36 = vmul.f32 %v251_v32, %v251_v32  ;;  %v260_v37 = vmul.f32 %v252_v33, %v252_v33  ;;  %v261_v38 = vmul.f32 %v253_v34, %v253_v34  ;;  %v262_v40 = vmul.f32 %v254_v35, %v254_v35 }
 0x1ec   :  { %v2703_v23 = vrot.slane %v1599_v21, %v2689_v18  ;;  %v1273_v26 = vrot.slane %v2711_v25, %v2708_v24 }
 0x1ed   :  { %v268_v39 = vadd.f32 %v260_v37, %v259_v36  ;;  %v1591_v36 = vrot.slane %v2686_v15, %v2723_v29  ;;  %v1595_v37 = vrot.slane %v2686_v15, %v2708_v24 }
 0x1ee   :  { %v2720_v27 = vrot.slane %v1273_v26, %v2689_v18 }
 0x1ef   :  { %v269_v41 = vadd.f32 %v268_v39, %v261_v38  ;;  %v2753_v38 = vrot.slane %v1591_v36, %v2689_v18  ;;  %v2756_v39 = vrot.slane %v1595_v37, %v2689_v18 }
 0x1f1   :  { %v270_v42 = vadd.f32 %v269_v41, %v262_v40  ;;  %v419_v40 = vrot.slane %v2665_v11, %v2723_v29  ;;  %v423_v41 = vrot.slane %v2665_v11, %v2708_v24 }
 0x1f3   :  { %271 = vadd.xlane.f32.xlu0 %v270_v42  ;;  %v427_v42 = vrot.slane %v2665_v11, %v2681_v14 }
 0x280   :  { %v272_v43 = vpop.xlane.xlu0 %271 }
 0x281   :  { %v274_v44 = vmul.f32 0.001953125, %v272_v43  ;;  %v415_v43 = vrot.slane %v2665_v11, %v2689_v18 }
 0x283   :  { %v276_v45 = vadd.f32 1e-05, %v274_v44  ;;  %v839_v44 = vsub.s32 3, %v2606_v4 }
 0x285   :  { %2293 = vrsqrt.f32 %v276_v45  ;;  %v2777_v45 = vand.u32 127, %v117_v0  ;;  %v2798_v0 = vrot.slane %v2665_v11, %v839_v44 }
 0x287   :  { %vm3335_vm14 = vcmp.lt.s32.totalorder %v2777_v45, 16 }
 0x28f   :  { %v2294_v47 = vpop.eup %2293 }
 0x290   :  { %v280_v48 = vmul.f32 %v2294_v47, %v234_v46  ;;  %v2783_v47 = vrot.slane %v423_v41, %v2689_v18 }
 0x292   :  { %288 = vperm.xlu1 %2202, %v280_v48   ;;  %v2786_v48 = vrot.slane %v427_v42, %v2689_v18  ;;  %vm3331_vm0 = vcmp.eq.s32.totalorder %v2783_v47, 1 }
 0x294   :  { %vm3330_vm1 = vcmp.eq.s32.totalorder %v2786_v48, 1 }
 0x296   :  { %2203 = vset.pattern.permute.xlu1 %v3333_v49 }
 0x297   :  { %306 = vperm.xlu1 %2203, %v234_v46   ;;  %v2780_v46 = vrot.slane %v419_v40, %v2689_v18 }
 0x299   :  { %vm3334_vm15 = vcmp.eq.s32.totalorder %v2780_v46, 1 }
 0x311   :  { %v289_v50 = vpop.permute.xlu1 %288 }
 0x312   :  { %v295_v51 = vmul.f32 %v289_v50, %v251_v32  ;;  %v296_v52 = vmul.f32 %v289_v50, %v252_v33  ;;  %v298_v53 = vmul.f32 %v289_v50, %v254_v35  ;;  %v297_v55 = vmul.f32 %v289_v50, %v253_v34 }
 0x313   :  { %v1433_v32 = vrot.slane %v2655_v9, %v2708_v24  ;;  %v1437_v33 = vrot.slane %v2655_v9, %v2681_v14  ;;  %v353_v50 = vsel %vm352_vm12, 1, %v2477_v3  ;;  %vm662_vm12 = vcmp.lt.s32.totalorder %v2777_v45, 15 }
 0x314   :  { %v369_v13 = vrot.slane %v353_v50, %v2681_v14 }
 0x315   :  { %v2741_v34 = vrot.slane %v1433_v32, %v2689_v18  ;;  %v2744_v35 = vrot.slane %v1437_v33, %v2689_v18 }
 0x316   :  { %v307_v54 = vpop.permute.xlu1 %306 }
 0x317   :  { %v313_v56 = vadd.f32 %v307_v54, %v295_v51  ;;  %v314_v57 = vadd.f32 %v307_v54, %v296_v52  ;;  %v316_v58 = vadd.f32 %v307_v54, %v298_v53  ;;  %v315_v59 = vadd.f32 %v307_v54, %v297_v55 }
 0x318   :  { %v2790_v51 = vrot.slane %v415_v43, %v2689_v18  ;;  %v2793_v52 = vsub.s32 1, %v2606_v4  ;;  %v361_v54 = vrot.slane %v353_v50, %v2723_v29 }
 0x319   :  { %vm321_vm2 = vcmp.gt.f32.partialorder %v313_v56, 0.0  ;;  %vm322_vm3 = vcmp.gt.f32.partialorder %v314_v57, 0.0  ;;  %vm324_vm4 = vcmp.gt.f32.partialorder %v316_v58, 0.0  ;;  %v325_v60 = vmul.f32 0.2, %v313_v56 }
 0x31a   :  { %v326_v61 = vmul.f32 0.2, %v314_v57  ;;  %v328_v62 = vmul.f32 0.2, %v316_v58  ;;  %v327_v2 = vmul.f32 0.2, %v315_v59  ;;  %v377_v10 = vrot.slane %v361_v54, %v2689_v18 }
 0x31b   :  { %v2627_v63 = vsel %vm321_vm2, %v313_v56, %v325_v60  ;;  %vm323_vm5 = vcmp.gt.f32.partialorder %v315_v59, 0.0  ;;  %vm3332_vm2 = vcmp.eq.s32.totalorder %v2790_v51, 1  ;;  %v843_v60 = vsub.s32 5, %v2606_v4 }
 0x31c   :  { %v2629_v1 = vsel %vm322_vm3, %v314_v57, %v326_v61  ;;  %v2631_v5 = vsel %vm324_vm4, %v316_v58, %v328_v62  ;;  %v2641_v7 = vsel %vm323_vm5, %v315_v59, %v327_v2  ;;  %vm343_vm3 = vcmp.lt.s32.totalorder %v2777_v45, 17  ;;  %vm2836_vm4 = vmand %vm102_vm7, %vm2670_vm8 }
 0x31d   :  { %v2635_v6 = vpack.i.bf16 %v2629_v1, %v2627_v63  ;;  %405 = vrot.lane.b32.xlu1 %v2631_v5, %s2479_s5  ;;  %v856_v58 = vrot.slane %v2798_v0, %v2793_v52  ;;  %v357_v59 = vrot.slane %v353_v50, %v2689_v18  ;;  %v365_v61 = vrot.slane %v353_v50, %v2708_v24 }
 0x31e   :  { %vm458_vm5 = vcmask 64512   ;;  %v844_v12 = vrot.slane %v2665_v11, %v843_v60  ;;  %vm387_vm6 = vcmp.eq.s32.totalorder %v377_v10, 1  ;;  %vm828_vm7 = vcmp.lt.s32.totalorder %v2777_v45, 1 }
 0x31f   :  { %2205 = vrot.lane.b32.xlu0 %v2635_v6, %s2479_s5  ;;  %v373_v50 = vrot.slane %v357_v59, %v2689_v18  ;;  %v381_v8 = vrot.slane %v365_v61, %v2689_v18  ;;  %v453_v59 = vld [vmem:[#allocation8 + $0x4] sm:$0xf]  ;;  %vm2865_vm9 = vcmp.eq.s32.totalorder %v856_v58, 1  ;;  %v836_v58 = vrot.slane %v2665_v11, %v2793_v52 }
 0x320   :  { %v860_v10 = vrot.slane %v844_v12, %v2793_v52 }
 0x321   :  { %403 = vrot.lane.b32.xlu1 %v2641_v7, %s2479_s5  ;;  %vm386_vm8 = vcmp.eq.s32.totalorder %v373_v50, 1  ;;  %vm388_vm10 = vcmp.eq.s32.totalorder %v381_v8, 1  ;;  %v1265_v50 = vrot.slane %v2711_v25, %v2689_v18 }
 0x323   :  { %660 = vrot.lane.b32.xlu0 %v2631_v5, %s2480_s19 }
 0x325   :  { %2210 = vrot.lane.b32.xlu1 %v2635_v6, %s2481_s1 }
 0x327   :  { %2220 = vrot.lane.b32.xlu0 %v2635_v6, %s2482_s0 }
 0x329   :  { %339 = vrot.lane.b32.xlu1 %v2631_v5, %s2481_s1 }
 0x32b   :  { %824 = vrot.lane.b32.xlu0 %v2641_v7, %s2482_s0 }
 0x32d   :  { %337 = vrot.lane.b32.xlu1 %v2641_v7, %s2481_s1 }
 0x32f   :  { %1091 = vrot.lane.b32.xlu0 %v2641_v7, %s2483_s12 }
 0x331   :  { %2215 = vrot.lane.b32.xlu1 %v2635_v6, %s2480_s19 }
 0x333   :  { %2230 = vrot.lane.b32.xlu0 %v2635_v6, %s2484_s22 }
 0x335   :  { %658 = vrot.lane.b32.xlu1 %v2641_v7, %s2480_s19 }
 0x337   :  { %1253 = vrot.lane.b32.xlu0 %v2631_v5, %s2484_s22 }
 0x339   :  { %826 = vrot.lane.b32.xlu1 %v2631_v5, %s2482_s0 }
 0x33b   :  { %1413 = vrot.lane.b32.xlu0 %v2641_v7, %s2485_s23 }
 0x33d   :  { %2225 = vrot.lane.b32.xlu1 %v2635_v6, %s2483_s12 }
 0x33f   :  { %2240 = vrot.lane.b32.xlu0 %v2635_v6, %s2486_s24 }
 0x341   :  { %1093 = vrot.lane.b32.xlu1 %v2631_v5, %s2483_s12 }
 0x343   :  { %1575 = vrot.lane.b32.xlu0 %v2631_v5, %s2486_s24 }
 0x345   :  { %1251 = vrot.lane.b32.xlu1 %v2641_v7, %s2484_s22 }
 0x349   :  { %2235 = vrot.lane.b32.xlu1 %v2635_v6, %s2485_s23 }
 0x34d   :  { %1415 = vrot.lane.b32.xlu1 %v2631_v5, %s2485_s23 }
 0x351   :  { %1573 = vrot.lane.b32.xlu1 %v2641_v7, %s2486_s24 }
 0x38f   :  { %v406_v53 = vpop.permute.xlu1 %405 }
 0x391   :  { %v2206_v55 = vpop.permute.xlu0 %2205 }
 0x392   :  { %v2208_v56 = vunpack.i.h.bf16 %v2206_v55  ;;  %v2207_v57 = vunpack.i.l.bf16 %v2206_v55 }
 0x393   :  { %v404_v6 = vpop.permute.xlu1 %403 }
 0x394   :  { %v410_v62 = vsel %vm3335_vm14, %v2207_v57, %v2208_v56  ;;  %v411_v2 = vsel %vm3335_vm14, %v406_v53, %v2207_v57  ;;  %v408_v21 = vsel %vm3335_vm14, %v404_v6, %v406_v53  ;;  %v409_v26 = vsel %vm3335_vm14, %v2208_v56, %v404_v6 }
 0x395   :  { %v449_v19 = vsel %vm3334_vm15, %v410_v62, 0.0  ;;  %v2824_v30 = vpop.permute.xlu0 %660  ;;  %v448_v32 = vsel %vm3332_vm2, %v411_v2, 0.0  ;;  %v450_v33 = vsel %vm3331_vm0, %v409_v26, 0.0  ;;  %v451_v36 = vsel %vm3330_vm1, %v408_v21, 0.0 }
 0x396   :  { %v455_v37 = vpack.c.bf16 %v449_v19, %v449_v19  ;;  %v454_v40 = vpack.c.bf16 %v448_v32, %v448_v32  ;;  %v456_v42 = vpack.c.bf16 %v450_v33, %v450_v33  ;;  %v457_v43 = vpack.c.bf16 %v451_v36, %v451_v36 }
 0x397   :  { %v2211_v0 = vpop.permute.xlu1 %2210  ;;  %v672_v62 = vsel %vm2836_vm4, 1, %v2477_v3  ;;  %v385_v2 = vrot.slane %v369_v13, %v2689_v18  ;;  %v847_v6 = vsub.s32 7, %v2606_v4  ;;  %vm2906_vm4 = vcmp.eq.s32.totalorder %v860_v10, 1 }
 0x398   :  { %2069 = vmatprep.subr.msk.bf16.mxu0 %vm462_vm13, %v455_v37  ;;  %v464_v53 = vsel %vm462_vm13, %v454_v40, 0  ;;  %v2213_v54 = vunpack.i.h.bf16 %v2211_v0  ;;  %v2212_v55 = vunpack.i.l.bf16 %v2211_v0  ;;  %2071 = vmatprep.subr.msk.bf16.mxu1 %vm462_vm13, %v457_v43  ;;  %v470_v57 = vsel %vm462_vm13, %v456_v42, 0 }
 0x399   :  { %v2848_v56 = vpop.permute.xlu0 %2220  ;;  %476 = vmatpush1.bf16.msra.mxu0 %v464_v53  ;;  %517 = vmatpush1.bf16.msra.mxu1 %v470_v57  ;;  %v684_v19 = vrot.slane %v672_v62, %v2708_v24  ;;  %v688_v32 = vrot.slane %v672_v62, %v2681_v14  ;;  %v680_v33 = vrot.slane %v672_v62, %v2723_v29  ;;  %vm389_vm11 = vcmp.eq.s32.totalorder %v385_v2, 1 }
 0x39a   :  { %v346_v61 = vsel %vm343_vm3, %v2212_v55, %v2213_v54  ;;  %v676_v13 = vrot.slane %v672_v62, %v2689_v18  ;;  %v848_v42 = vrot.slane %v2665_v11, %v847_v6  ;;  %v2223_v53 = vunpack.i.h.bf16 %v2848_v56 }
 0x39b   :  { %v340_v21 = vpop.permute.xlu1 %339  ;;  %v391_v26 = vsel %vm387_vm6, %v346_v61, 0.0  ;;  %v700_v0 = vrot.slane %v684_v19, %v2689_v18  ;;  %v696_v57 = vrot.slane %v680_v33, %v2689_v18  ;;  %v2222_v11 = vunpack.i.l.bf16 %v2848_v56 }
 0x39c   :  { %2070 = vmatmul.mubr.msk.bf16.vlgmr.msra.gmra.mrb[4].mxu0 %vm458_vm5, %v453_v59  ;;  %v347_v37 = vsel %vm343_vm3, %v340_v21, %v2212_v55  ;;  %2072 = vmatmul.mubr.msk.bf16.vlgmr.msra.gmra.mrb[4].mxu1 %vm458_vm5, %v453_v59  ;;  %v396_v40 = vpack.c.bf16 %v391_v26, %v391_v26  ;;  %v704_v55 = vrot.slane %v688_v32, %v2689_v18  ;;  %vm1617_vm15 = vcmp.eq.s32.totalorder %v2753_v38, 1 }
 0x39d   :  { %v2872_v24 = vpop.permute.xlu0 %824  ;;  %604 = vmatprep.mubr.bf16.mxu0 %v2477_v3  ;;  %v390_v41 = vsel %vm386_vm8, %v347_v37, 0.0  ;;  %645 = vmatprep.mubr.bf16.mxu1 %v2477_v3  ;;  %v692_v59 = vrot.slane %v676_v13, %v2689_v18  ;;  %v2903_v33 = vrot.slane %v836_v58, %v2793_v52  ;;  %v864_v13 = vrot.slane %v848_v42, %v2793_v52 }
 0x39e   :  { %v395_v43 = vpack.c.bf16 %v390_v41, %v390_v41  ;;  %2073 = vmatprep.subr.msk.bf16.mxu0 %vm462_vm13, %v396_v40  ;;  %v1281_v41 = vrot.slane %v1265_v50, %v2689_v18  ;;  %vm707_vm6 = vcmp.eq.s32.totalorder %v700_v0, 1  ;;  %vm708_vm8 = vcmp.eq.s32.totalorder %v704_v55, 1 }
 0x39f   :  { %v338_v12 = vpop.permute.xlu1 %337  ;;  %v831_v2 = vsel %vm828_vm7, %v2222_v11, %v2223_v53  ;;  %vm3336_vm1 = vcmp.eq.s32.totalorder %v2903_v33, 1  ;;  %vm2923_vm0 = vcmp.eq.s32.totalorder %v864_v13, 1  ;;  %v984_v4 = vpack.c.bf16 %v2641_v7, %v2641_v7 }
 0x3a0   :  { %v344_v62 = vsel %vm343_vm3, %v338_v12, %v340_v21  ;;  %v345_v61 = vsel %vm343_vm3, %v2213_v54, %v338_v12  ;;  %v561_v26 = vsel %vm462_vm13, %v395_v43, 0  ;;  %vm1255_vm3 = vcmp.lt.s32.totalorder %v2777_v45, 113  ;;  %v394_v12 = vld [vmem:[#allocation8] sm:$0xf] }
 0x3a1   :  { %v2897_v19 = vpop.permute.xlu0 %1091  ;;  %v392_v37 = vsel %vm388_vm10, %v345_v61, 0.0  ;;  %v393_v32 = vsel %vm389_vm11, %v344_v62, 0.0  ;;  %573 = vmatpush1.bf16.msra.mxu0 %v561_v26  ;;  %vm706_vm10 = vcmp.eq.s32.totalorder %v696_v57, 1  ;;  %vm705_vm11 = vcmp.eq.s32.totalorder %v692_v59, 1 }
 0x3a2   :  { %v397_v21 = vpack.c.bf16 %v392_v37, %v392_v37  ;;  %v398_v54 = vpack.c.bf16 %v393_v32, %v393_v32  ;;  %vm1294_vm2 = vcmp.eq.s32.totalorder %v1281_v41, 1  ;;  %v1587_v32 = vrot.slane %v2686_v15, %v2689_v18 }
 0x3a3   :  { %v2216_v8 = vpop.permute.xlu1 %2215  ;;  %vm1618_vm14 = vcmp.eq.s32.totalorder %v2756_v39, 1 }
 0x3a4   :  { %v2218_v10 = vunpack.i.h.bf16 %v2216_v8  ;;  %v2217_v58 = vunpack.i.l.bf16 %v2216_v8  ;;  %2075 = vmatprep.subr.msk.bf16.mxu1 %vm462_vm13, %v398_v54  ;;  %v567_v43 = vsel %vm462_vm13, %v397_v21, 0  ;;  %v870_v21 = vsel %vm2865_vm9, %v831_v2, 0.0 }
 0x3a5   :  { %v2917_v42 = vpop.permute.xlu0 %2230  ;;  %614 = vmatpush1.bf16.msra.mxu1 %v567_v43 }
 0x3a6   :  { %v2233_v50 = vunpack.i.h.bf16 %v2917_v42  ;;  %v2232_v62 = vunpack.i.l.bf16 %v2917_v42  ;;  %v665_v26 = vsel %vm662_vm12, %v2217_v58, %v2218_v10  ;;  %v666_v37 = vsel %vm662_vm12, %v2824_v30, %v2217_v58 }
 0x3a7   :  { %v659_v54 = vpop.permute.xlu1 %658  ;;  %v710_v13 = vsel %vm706_vm10, %v665_v26, 0.0  ;;  %v709_v8 = vsel %vm705_vm11, %v666_v37, 0.0  ;;  %v830_v26 = vsel %vm828_vm7, %v2223_v53, %v2872_v24  ;;  %vm1296_vm10 = vcmp.eq.s32.totalorder %v2720_v27, 1 }
 0x3a8   :  { %2074 = vmatmul.mubr.msk.bf16.vlgmr.msra.gmra.mrb[4].mxu0 %vm458_vm5, %v394_v12  ;;  %v1258_v58 = vsel %vm1255_vm3, %v2232_v62, %v2233_v50  ;;  %v663_v15 = vsel %vm662_vm12, %v659_v54, %v2824_v30  ;;  %v664_v2 = vsel %vm662_vm12, %v2218_v10, %v659_v54  ;;  %2076 = vmatmul.mubr.msk.bf16.vlgmr.msra.gmra.mrb[4].mxu1 %vm458_vm5, %v394_v12  ;;  %v871_v41 = vsel %vm2906_vm4, %v830_v26, 0.0 }
 0x3a9   :  { %v2951_v57 = vpop.permute.xlu0 %1253  ;;  %v716_v59 = vpack.c.bf16 %v710_v13, %v710_v13  ;;  %v715_v43 = vpack.c.bf16 %v709_v8, %v709_v8  ;;  %v711_v37 = vsel %vm707_vm6, %v664_v2, 0.0  ;;  %v712_v49 = vsel %vm708_vm8, %v663_v15, 0.0  ;;  %766 = vmatprep.mubr.bf16.mxu0 %v2477_v3  ;;  %807 = vmatprep.mubr.bf16.mxu1 %v2477_v3 }
 0x3aa   :  { %v2961_v30 = vsel %vm1294_vm2, %v1258_v58, 0.0  ;;  %v717_v10 = vpack.c.bf16 %v711_v37, %v711_v37  ;;  %v718_v12 = vpack.c.bf16 %v712_v49, %v712_v49  ;;  %v876_v13 = vpack.c.bf16 %v870_v21, %v870_v21 }
 0x3ab   :  { %2078 = vmatprep.subr.msk.bf16.mxu0 %vm462_vm13, %v716_v59  ;;  %v723_v54 = vsel %vm462_vm13, %v715_v43, 0  ;;  %v827_v8 = vpop.permute.xlu1 %826  ;;  %v877_v2 = vpack.c.bf16 %v871_v41, %v871_v41  ;;  %v714_v43 = vld [vmem:[#allocation8 + $0x8] sm:$0xf]  ;;  %vm1577_vm2 = vcmp.lt.s32.totalorder %v2777_v45, 111  ;;  %v1107_v26 = vrot.slane %v2655_v9, %v839_v44 }
 0x3ac   :  { %735 = vmatpush1.bf16.msra.mxu0 %v723_v54  ;;  %v829_v0 = vsel %vm828_vm7, %v2872_v24, %v827_v8  ;;  %v832_v53 = vsel %vm828_vm7, %v827_v8, %v2222_v11  ;;  %2080 = vmatprep.subr.msk.bf16.mxu1 %vm462_vm13, %v718_v12  ;;  %v729_v55 = vsel %vm462_vm13, %v717_v10, 0  ;;  %v1603_v24 = vrot.slane %v1587_v32, %v2689_v18 }
 0x3ad   :  { %2082 = vmatprep.subr.msk.bf16.mxu0 %vm462_vm13, %v876_v13  ;;  %v2974_v49 = vpop.permute.xlu0 %1413  ;;  %v869_v21 = vsel %vm3336_vm1, %v832_v53, 0.0  ;;  %v872_v56 = vsel %vm2923_vm0, %v829_v0, 0.0  ;;  %776 = vmatpush1.bf16.msra.mxu1 %v729_v55  ;;  %v1115_v10 = vrot.slane %v2655_v9, %v847_v6  ;;  %vm1619_vm6 = vcmp.eq.s32.totalorder %v2703_v23, 1 }
 0x3ae   :  { %v878_v11 = vpack.c.bf16 %v872_v56, %v872_v56  ;;  %v875_v58 = vpack.c.bf16 %v869_v21, %v869_v21  ;;  %vm1616_vm12 = vcmp.eq.s32.totalorder %v1603_v24, 1  ;;  %v983_v13 = vpack.c.bf16 %v2629_v1, %v2629_v1 }
 0x3af   :  { %v2984_v15 = vpop.permute.xlu1 %2225  ;;  %v889_v6 = vsel %vm462_vm13, %v877_v2, 0  ;;  %v985_v0 = vpack.c.bf16 %v2631_v5, %v2631_v5  ;;  %v1123_v1 = vrot.slane %v1107_v26, %v2793_v52  ;;  %vm1095_vm8 = vcmp.lt.s32.totalorder %v2777_v45, 127 }
 0x3b0   :  { %2084 = vmatprep.subr.msk.bf16.mxu1 %vm462_vm13, %v878_v11  ;;  %v883_v54 = vsel %vm462_vm13, %v875_v58, 0  ;;  %v2228_v55 = vunpack.i.h.bf16 %v2984_v15  ;;  %v1131_v21 = vrot.slane %v1115_v10, %v2793_v52  ;;  %v2227_v24 = vunpack.i.l.bf16 %v2984_v15 }
 0x3b1   :  { %v2987_v59 = vpop.permute.xlu0 %2240  ;;  %vm3035_vm11 = vcmp.eq.s32.totalorder %v1123_v1, 1  ;;  %v1103_v2 = vrot.slane %v2655_v9, %v2793_v52  ;;  %v982_v10 = vpack.c.bf16 %v2627_v63, %v2627_v63 }
 0x3b2   :  { %v2243_v37 = vunpack.i.h.bf16 %v2987_v59  ;;  %v2242_v32 = vunpack.i.l.bf16 %v2987_v59  ;;  %v1097_v23 = vsel %vm1095_vm8, %v2228_v55, %v2897_v19  ;;  %v1259_v59 = vsel %vm1255_vm3, %v2951_v57, %v2232_v62 }
 0x3b3   :  { %v1094_v12 = vpop.permute.xlu1 %1093 }
 0x3b4   :  { %2079 = vmatmul.mubr.msk.bf16.vlgmr.msra.gmra.mrb[4].mxu0 %vm458_vm5, %v714_v43  ;;  %v1580_v44 = vsel %vm1577_vm2, %v2242_v32, %v2243_v37  ;;  %2081 = vmatmul.mubr.msk.bf16.vlgmr.msra.gmra.mrb[4].mxu1 %vm458_vm5, %v714_v43  ;;  %v1099_v15 = vsel %vm1095_vm8, %v1094_v12, %v2227_v24  ;;  %v1111_v43 = vrot.slane %v2655_v9, %v843_v60 }
 0x3b5   :  { %895 = vmatpush1.bf16.msra.mxu0 %v883_v54  ;;  %v1576_v8 = vpop.permute.xlu0 %1575  ;;  %v3011_v53 = vsel %vm1616_vm12, %v1580_v44, 0.0  ;;  %936 = vmatpush1.bf16.msra.mxu1 %v889_v6  ;;  %vm3048_vm12 = vcmp.eq.s32.totalorder %v1131_v21, 1  ;;  %v1137_v54 = vsel %vm3035_vm11, %v1097_v23, 0.0  ;;  %v874_v44 = vld [vmem:[#allocation8 + $0xc] sm:$0xf]  ;;  %v1277_v60 = vrot.slane %v2711_v25, %v2681_v14 }
 0x3b6   :  { %v1581_v41 = vsel %vm1577_vm2, %v1576_v8, %v2242_v32  ;;  %2086 = vmatprep.subr.msk.bf16.mxu0 %vm462_vm13, %v983_v13  ;;  %2088 = vmatprep.subr.msk.bf16.mxu1 %vm462_vm13, %v985_v0  ;;  %v1269_v13 = vrot.slane %v2711_v25, %v2723_v29  ;;  %v1139_v6 = vsel %vm3048_vm12, %v1099_v15, 0.0  ;;  %v3067_v0 = vrot.slane %v1103_v2, %v2793_v52 }
 0x3b7   :  { %v3022_v56 = vsel %vm1619_vm6, %v1581_v41, 0.0  ;;  %926 = vmatprep.mubr.bf16.mxu0 %v2477_v3  ;;  %v1252_v5 = vpop.permute.xlu1 %1251  ;;  %967 = vmatprep.mubr.bf16.mxu1 %v2477_v3  ;;  %v1127_v63 = vrot.slane %v1111_v43, %v2793_v52  ;;  %v990_v29 = vsel %vm462_vm13, %v982_v10, 0  ;;  %v1143_v41 = vpack.c.bf16 %v1137_v54, %v1137_v54  ;;  %v981_v10 = vld [vmem:[#allocation8 + $0x10] sm:$0xf] }
 0x3b8   :  { %v1256_v11 = vsel %vm1255_vm3, %v1252_v5, %v2951_v57  ;;  %v1145_v21 = vpack.c.bf16 %v1139_v6, %v1139_v6  ;;  %v1285_v7 = vrot.slane %v1269_v13, %v2689_v18  ;;  %v996_v14 = vsel %vm462_vm13, %v984_v4, 0 }
 0x3b9   :  { %v3039_v27 = vsel %vm1296_vm10, %v1256_v11, 0.0  ;;  %v1293_v25 = vrot.slane %v1277_v60, %v2689_v18  ;;  %v1098_v52 = vsel %vm1095_vm8, %v2227_v24, %v2228_v55  ;;  %vm1132_vm6 = vcmp.eq.s32.totalorder %v3067_v0, 1 }
 0x3ba   :  { %v1096_v11 = vsel %vm1095_vm8, %v2897_v19, %v1094_v12  ;;  %vm3085_vm10 = vcmp.eq.s32.totalorder %v1127_v63, 1  ;;  %vm1295_vm1 = vcmp.eq.s32.totalorder %v1285_v7, 1  ;;  %v1136_v12 = vsel %vm1132_vm6, %v1098_v52, 0.0 }
 0x3bb   :  { %v3052_v32 = vpop.permute.xlu1 %2235  ;;  %v1138_v38 = vsel %vm3085_vm10, %v1096_v11, 0.0  ;;  %v1257_v39 = vsel %vm1255_vm3, %v2233_v50, %v1252_v5  ;;  %v1425_v4 = vrot.slane %v2655_v9, %v2689_v18  ;;  %v1304_v6 = vpack.c.bf16 %v2961_v30, %v2961_v30 }
 0x3bc   :  { %v1299_v43 = vsel %vm1295_vm1, %v1257_v39, 0.0  ;;  %v2237_v62 = vunpack.i.l.bf16 %v3052_v32  ;;  %vm3337_vm1 = vcmp.eq.s32.totalorder %v2744_v35, 1  ;;  %v1463_v39 = vld [vmem:[#allocation8 + $0x1c] sm:$0xf] }
 0x3bd   :  { %v1305_v13 = vpack.c.bf16 %v1299_v43, %v1299_v43  ;;  %v3147_v9 = vrot.slane %v1425_v4, %v2689_v18 }
 0x3bf   :  { %v3070_v1 = vpop.permute.xlu1 %1415  ;;  %vm3340_vm3 = vcmp.eq.s32.totalorder %v3147_v9, 1 }
 0x3c0   :  { %2083 = vmatmul.mubr.msk.bf16.vlgmr.msra.gmra.mrb[4].mxu0 %vm458_vm5, %v874_v44  ;;  %2085 = vmatmul.mubr.msk.bf16.vlgmr.msra.gmra.mrb[4].mxu1 %vm458_vm5, %v874_v44  ;;  %v2238_v44 = vunpack.i.h.bf16 %v3052_v32  ;;  %v1306_v32 = vpack.c.bf16 %v3039_v27, %v3039_v27 }
 0x3c1   :  { %1002 = vmatpush1.bf16.msra.mxu0 %v990_v29  ;;  %1043 = vmatpush1.bf16.msra.mxu1 %v996_v14  ;;  %v1141_v29 = vld [vmem:[#allocation8 + $0x14] sm:$0xf] }
 0x3c2   :  { %2090 = vmatprep.subr.msk.bf16.mxu0 %vm462_vm13, %v1143_v41  ;;  %2092 = vmatprep.subr.msk.bf16.mxu1 %vm462_vm13, %v1145_v21  ;;  %v1312_v21 = vsel %vm462_vm13, %v1304_v6, 0  ;;  %v1318_v30 = vsel %vm462_vm13, %v1306_v32, 0 }
 0x3c3   :  { %1033 = vmatprep.mubr.bf16.mxu0 %v2477_v3  ;;  %v1574_v55 = vpop.permute.xlu1 %1573  ;;  %1074 = vmatprep.mubr.bf16.mxu1 %v2477_v3 }
 0x3c4   :  { %v1578_v24 = vsel %vm1577_vm2, %v1574_v55, %v1576_v8  ;;  %v1579_v19 = vsel %vm1577_vm2, %v2243_v37, %v1574_v55  ;;  %vm1297_vm2 = vcmp.eq.s32.totalorder %v1293_v25, 1  ;;  %v1142_v37 = vpack.c.bf16 %v1136_v12, %v1136_v12 }
 0x3c5   :  { %v3108_v2 = vsel %vm1617_vm15, %v1579_v19, 0.0  ;;  %v3110_v15 = vsel %vm1618_vm14, %v1578_v24, 0.0  ;;  %v1144_v8 = vpack.c.bf16 %v1138_v38, %v1138_v38  ;;  %v1301_v54 = vsel %vm1297_vm2, %v1259_v59, 0.0  ;;  %v1303_v24 = vld [vmem:[#allocation8 + $0x18] sm:$0xf] }
 0x3c6   :  { %v1150_v50 = vsel %vm462_vm13, %v1142_v37, 0  ;;  %v1307_v5 = vpack.c.bf16 %v1301_v54, %v1301_v54  ;;  %vm1417_vm14 = vcmp.lt.s32.totalorder %v2777_v45, 112  ;;  %vm3339_vm15 = vcmp.eq.s32.totalorder %v2731_v31, 1  ;;  %v1625_v37 = vld [vmem:[#allocation8 + $0x20] sm:$0xf] }
 0x3c7   :  { %v1156_v42 = vsel %vm462_vm13, %v1144_v8, 0  ;;  %v1419_v57 = vsel %vm1417_vm14, %v2238_v44, %v2974_v49  ;;  %v1421_v60 = vsel %vm1417_vm14, %v3070_v1, %v2237_v62  ;;  %v1420_v27 = vsel %vm1417_vm14, %v2237_v62, %v2238_v44 }
 0x3c8   :  { %v1459_v63 = vsel %vm3339_vm15, %v1419_v57, 0.0  ;;  %v1461_v41 = vsel %vm3337_vm1, %v1421_v60, 0.0  ;;  %v1418_v18 = vsel %vm1417_vm14, %v2974_v49, %v3070_v1  ;;  %vm3338_vm2 = vcmp.eq.s32.totalorder %v2741_v34, 1  ;;  %v3196_v57 = vld [vmem:[#allocation11] sm:$0xff] }
 0x3c9   :  { %v1465_v7 = vpack.c.bf16 %v1459_v63, %v1459_v63  ;;  %v1467_v14 = vpack.c.bf16 %v1461_v41, %v1461_v41  ;;  %v1458_v25 = vsel %vm3340_vm3, %v1420_v27, 0.0  ;;  %v1460_v52 = vsel %vm3338_vm2, %v1418_v18, 0.0 }
 0x3ca   :  { %v1464_v11 = vpack.c.bf16 %v1458_v25, %v1458_v25  ;;  %v1466_v55 = vpack.c.bf16 %v1460_v52, %v1460_v52  ;;  %v1627_v49 = vpack.c.bf16 %v3108_v2, %v3108_v2  ;;  %v1629_v19 = vpack.c.bf16 %v3022_v56, %v3022_v56 }
 0x3cb   :  { %v1626_v38 = vpack.c.bf16 %v3011_v53, %v3011_v53  ;;  %v1628_v56 = vpack.c.bf16 %v3110_v15, %v3110_v15  ;;  %v2487_v53 = vmov 3   ;;  %v2488_v25 = vmov 2  }
 0x3cc   :  { %2087 = vmatmul.mubr.msk.bf16.vlgmr.msra.gmra.mrb[4].mxu0 %vm458_vm5, %v981_v10  ;;  %2089 = vmatmul.mubr.msk.bf16.vlgmr.msra.gmra.mrb[4].mxu1 %vm458_vm5, %v981_v10  ;;  %v1472_v1 = vsel %vm462_vm13, %v1464_v11, 0  ;;  %v1478_v12 = vsel %vm462_vm13, %v1466_v55, 0 }
 0x3cd   :  { %1162 = vmatpush1.bf16.msra.mxu0 %v1150_v50  ;;  %1203 = vmatpush1.bf16.msra.mxu1 %v1156_v42  ;;  %v1634_v2 = vsel %vm462_vm13, %v1626_v38, 0  ;;  %v1640_v59 = vsel %vm462_vm13, %v1628_v56, 0 }
 0x3ce   :  { %2094 = vmatprep.subr.msk.bf16.mxu0 %vm462_vm13, %v1305_v13  ;;  %2096 = vmatprep.subr.msk.bf16.mxu1 %vm462_vm13, %v1307_v5 }
 0x3cf   :  { %1193 = vmatprep.mubr.bf16.mxu0 %v2477_v3  ;;  %1234 = vmatprep.mubr.bf16.mxu1 %v2477_v3 }
 0x3d0   :  { %2245 = vset.pattern.permute.xlu1 %v2487_v53  ;;  %2244 = vset.pattern.permute.xlu0 %v2488_v25 }
 0x3d8   :  { %2091 = vmatmul.mubr.msk.bf16.vlgmr.msra.gmra.mrb[4].mxu0 %vm458_vm5, %v1141_v29  ;;  %2093 = vmatmul.mubr.msk.bf16.vlgmr.msra.gmra.mrb[4].mxu1 %vm458_vm5, %v1141_v29 }
 0x3d9   :  { %1324 = vmatpush1.bf16.msra.mxu0 %v1312_v21  ;;  %1365 = vmatpush1.bf16.msra.mxu1 %v1318_v30 }
 0x3da   :  { %2098 = vmatprep.subr.msk.bf16.mxu0 %vm462_vm13, %v1465_v7  ;;  %2100 = vmatprep.subr.msk.bf16.mxu1 %vm462_vm13, %v1467_v14 }
 0x3db   :  { %1355 = vmatprep.mubr.bf16.mxu0 %v2477_v3  ;;  %1396 = vmatprep.mubr.bf16.mxu1 %v2477_v3 }
 0x3e4   :  { %2095 = vmatmul.mubr.msk.bf16.vlgmr.msra.gmra.mrb[4].mxu0 %vm458_vm5, %v1303_v24  ;;  %2097 = vmatmul.mubr.msk.bf16.vlgmr.msra.gmra.mrb[4].mxu1 %vm458_vm5, %v1303_v24 }
 0x3e5   :  { %1484 = vmatpush1.bf16.msra.mxu0 %v1472_v1  ;;  %1525 = vmatpush1.bf16.msra.mxu1 %v1478_v12 }
 0x3e6   :  { %2102 = vmatprep.subr.msk.bf16.mxu0 %vm462_vm13, %v1627_v49  ;;  %2104 = vmatprep.subr.msk.bf16.mxu1 %vm462_vm13, %v1629_v19 }
 0x3e7   :  { %1515 = vmatprep.mubr.bf16.mxu0 %v2477_v3  ;;  %1556 = vmatprep.mubr.bf16.mxu1 %v2477_v3 }
 0x3f0   :  { %2099 = vmatmul.mubr.msk.bf16.vlgmr.msra.gmra.mrb[4].mxu0 %vm458_vm5, %v1463_v39  ;;  %2101 = vmatmul.mubr.msk.bf16.vlgmr.msra.gmra.mrb[4].mxu1 %vm458_vm5, %v1463_v39 }
 0x3f1   :  { %1646 = vmatpush1.bf16.msra.mxu0 %v1634_v2  ;;  %1687 = vmatpush1.bf16.msra.mxu1 %v1640_v59 }
 0x3f2   :  { %1677 = vmatprep.mubr.bf16.mxu0 %v2477_v3  ;;  %1718 = vmatprep.mubr.bf16.mxu1 %v2477_v3 }
 0x3fc   :  { %2103 = vmatmul.mubr.msk.bf16.vlgmr.msra.gmra.mrb[4].mxu0 %vm458_vm5, %v1625_v37  ;;  %2105 = vmatmul.mubr.msk.bf16.vlgmr.msra.gmra.mrb[4].mxu1 %vm458_vm5, %v1625_v37  ;;  %v3359_v37 = vmov 1  }
 0x3fd   :  { %1837 = vmatprep.mubr.bf16.mxu0 %v2477_v3  ;;  %1878 = vmatprep.mubr.bf16.mxu1 %v2477_v3 }
 0x4cf   :  { %v1679_v15 = vpop.f32.mrb[4].mxu0  ;;  %v1720_v8 = vpop.f32.mrb[4].mxu1 }
 0x4d0   :  { %v1681_v43 = vpop.f32.mrb[5].mxu0  ;;  %v1722_v54 = vpop.f32.mrb[5].mxu1 }
 0x4d1   :  { %v1732_v10 = vadd.f32 %v1681_v43, %v1679_v15  ;;  %v1683_v13 = vpop.f32.mrb[6].mxu0  ;;  %v1724_v50 = vpop.f32.mrb[6].mxu1 }
 0x4d2   :  { %v1684_v5 = vpop.f32.mrb[7].mxu0  ;;  %v1725_v42 = vpop.f32.mrb[7].mxu1 }
 0x4d3   :  { %v1733_v44 = vadd.f32 %v1732_v10, %v1720_v8 }
 0x4d5   :  { %v1734_v62 = vadd.f32 %v1733_v44, %v1722_v54 }
 0x4d7   :  { %1735 = vadd.xlane.f32.xlu1 %v1734_v62 }
 0x4e8   :  { %1766 = vperm.xlu1 %2245, %v3196_v57  }
 0x4ec   :  { %2246 = vset.pattern.permute.xlu1 %v2477_v3 }
 0x50c   :  { %238 = vadd.xlane.f32.xlu1 %v2624_v28 }
 0x564   :  { %v1736_v4 = vpop.xlane.xlu1 %1735 }
 0x565   :  { %v1737_v60 = vmul.f32 0.001953125, %v1736_v4 }
 0x567   :  { %v1738_v6 = vsub.f32 %v1679_v15, %v1737_v60  ;;  %v1739_v32 = vsub.f32 %v1681_v43, %v1737_v60  ;;  %v1740_v63 = vsub.f32 %v1720_v8, %v1737_v60  ;;  %v1741_v29 = vsub.f32 %v1722_v54, %v1737_v60 }
 0x568   :  { %v1767_v3 = vpop.permute.xlu1 %1766 }
 0x569   :  { %v1742_v41 = vmul.f32 %v1738_v6, %v1738_v6  ;;  %v1743_v21 = vmul.f32 %v1739_v32, %v1739_v32  ;;  %v1744_v7 = vmul.f32 %v1740_v63, %v1740_v63  ;;  %v1745_v30 = vmul.f32 %v1741_v29, %v1741_v29 }
 0x56b   :  { %v1746_v14 = vadd.f32 %v1743_v21, %v1742_v41 }
 0x56d   :  { %v1747_v27 = vadd.f32 %v1746_v14, %v1744_v7 }
 0x56f   :  { %v1748_v18 = vadd.f32 %v1747_v27, %v1745_v30 }
 0x571   :  { %1749 = vadd.xlane.f32.xlu0 %v1748_v18  ;;  %v1785_v18 = vld [vmem:[#allocation10] sm:$0xf] }
 0x599   :  { %v239_v52 = vpop.xlane.xlu1 %238 }
 0x59a   :  { %v245_v28 = vmul.f32 0.001953125, %v239_v52 }
 0x59c   :  { %v3203_v11 = vsub.f32 %v2612_v16, %v245_v28  ;;  %v3206_v55 = vsub.f32 %v2614_v17, %v245_v28  ;;  %v3209_v24 = vsub.f32 %v2618_v20, %v245_v28  ;;  %v3212_v49 = vsub.f32 %v2620_v22, %v245_v28 }
 0x59e   :  { %v255_v1 = vmul.f32 %v3203_v11, %v3203_v11  ;;  %v256_v19 = vmul.f32 %v3206_v55, %v3206_v55  ;;  %v257_v12 = vmul.f32 %v3209_v24, %v3209_v24  ;;  %v258_v17 = vmul.f32 %v3212_v49, %v3212_v49 }
 0x5a0   :  { %v263_v16 = vadd.f32 %v256_v19, %v255_v1 }
 0x5a2   :  { %v264_v38 = vadd.f32 %v263_v16, %v257_v12 }
 0x5a4   :  { %v265_v56 = vadd.f32 %v264_v38, %v258_v17 }
 0x5a6   :  { %266 = vadd.xlane.f32.xlu1 %v265_v56 }
 0x5fe   :  { %v1750_v20 = vpop.xlane.xlu0 %1749 }
 0x5ff   :  { %v1751_v39 = vmul.f32 0.001953125, %v1750_v20 }
 0x601   :  { %v1752_v22 = vadd.f32 1e-05, %v1751_v39 }
 0x603   :  { %2295 = vrsqrt.f32 %v1752_v22 }
 0x60d   :  { %v2296_v2 = vpop.eup %2295 }
 0x60e   :  { %v1754_v59 = vmul.f32 %v2296_v2, %v3196_v57 }
 0x610   :  { %1757 = vperm.xlu0 %2244, %v1754_v59  }
 0x614   :  { %2247 = vset.pattern.permute.xlu0 %v3359_v37 }
 0x68f   :  { %v1758_v15 = vpop.permute.xlu0 %1757 }
 0x690   :  { %v1760_v8 = vmul.f32 %v1758_v15, %v1738_v6  ;;  %v1761_v43 = vmul.f32 %v1758_v15, %v1739_v32  ;;  %v1762_v10 = vmul.f32 %v1758_v15, %v1740_v63  ;;  %v1763_v54 = vmul.f32 %v1758_v15, %v1741_v29  ;;  %v267_v15 = vpop.xlane.xlu1 %266 }
 0x692   :  { %v1769_v13 = vadd.f32 %v1767_v3, %v1760_v8  ;;  %v1770_v50 = vadd.f32 %v1767_v3, %v1761_v43  ;;  %v1771_v5 = vadd.f32 %v1767_v3, %v1762_v10  ;;  %v1772_v42 = vadd.f32 %v1767_v3, %v1763_v54 }
 0x693   :  { %v273_v54 = vmul.f32 0.001953125, %v267_v15 }
 0x694   :  { %vm1774_vm1 = vcmp.gt.f32.partialorder %v1770_v50, 0.0  ;;  %v1778_v44 = vmul.f32 0.2, %v1770_v50  ;;  %vm1776_vm2 = vcmp.gt.f32.partialorder %v1772_v42, 0.0  ;;  %v1780_v62 = vmul.f32 0.2, %v1772_v42 }
 0x695   :  { %vm1773_vm15 = vcmp.gt.f32.partialorder %v1769_v13, 0.0  ;;  %v1777_v4 = vmul.f32 0.2, %v1769_v13  ;;  %vm1775_vm3 = vcmp.gt.f32.partialorder %v1771_v5, 0.0  ;;  %v1779_v60 = vmul.f32 0.2, %v1771_v5 }
 0x696   :  { %v1782_v41 = vsel %vm1774_vm1, %v1770_v50, %v1778_v44  ;;  %v1784_v21 = vsel %vm1776_vm2, %v1772_v42, %v1780_v62  ;;  %v275_v44 = vadd.f32 1e-05, %v273_v54  ;;  %vm3370_vm2 = vcmp.eq.s32.totalorder %v2731_v31, 1 }
 0x697   :  { %v1787_v7 = vpack.c.bf16 %v1782_v41, %v1782_v41  ;;  %v1789_v14 = vpack.c.bf16 %v1784_v21, %v1784_v21  ;;  %v1781_v6 = vsel %vm1773_vm15, %v1769_v13, %v1777_v4  ;;  %v1783_v32 = vsel %vm1775_vm3, %v1771_v5, %v1779_v60 }
 0x698   :  { %v1786_v63 = vpack.c.bf16 %v1781_v6, %v1781_v6  ;;  %v1788_v29 = vpack.c.bf16 %v1783_v32, %v1783_v32  ;;  %2297 = vrsqrt.f32 %v275_v44  ;;  %v2301_v6 = vld [vmem:[#allocation11 + $0x8] sm:$0xff]  ;;  %vm3360_vm3 = vcmp.eq.s32.totalorder %v2903_v33, 1 }
 0x699   :  { %2106 = vmatprep.subr.msk.bf16.mxu0 %vm462_vm13, %v1787_v7  ;;  %2108 = vmatprep.subr.msk.bf16.mxu1 %vm462_vm13, %v1789_v14 }
 0x69a   :  { %v1794_v30 = vsel %vm462_vm13, %v1786_v63, 0  ;;  %v1800_v27 = vsel %vm462_vm13, %v1788_v29, 0 }
 0x69b   :  { %1806 = vmatpush1.bf16.msra.mxu0 %v1794_v30  ;;  %1847 = vmatpush1.bf16.msra.mxu1 %v1800_v27 }
 0x69e   :  { %2107 = vmatmul.mubr.msk.bf16.vlgmr.msra.gmra.mrb[8].mxu0 %vm458_vm5, %v1785_v18  ;;  %2109 = vmatmul.mubr.msk.bf16.vlgmr.msra.gmra.mrb[8].mxu1 %vm458_vm5, %v1785_v18 }
 0x6a2   :  { %v2298_v4 = vpop.eup %2297 }
 0x6a3   :  { %v279_v60 = vmul.f32 %v2298_v4, %v3196_v57 }
 0x771   :  { %v1839_v3 = vpop.f32.mrb[8].mxu0  ;;  %v1880_v52 = vpop.f32.mrb[8].mxu1 }
 0x772   :  { %v1841_v28 = vpop.f32.mrb[9].mxu0  ;;  %v1882_v1 = vpop.f32.mrb[9].mxu1 }
 0x773   :  { %v1887_v19 = vadd.f32 %v1841_v28, %v1839_v3  ;;  %v1843_v12 = vpop.f32.mrb[10].mxu0  ;;  %v1884_v16 = vpop.f32.mrb[10].mxu1 }
 0x774   :  { %v1844_v17 = vpop.f32.mrb[11].mxu0  ;;  %v1885_v38 = vpop.f32.mrb[11].mxu1 }
 0x775   :  { %v1888_v56 = vadd.f32 %v1887_v19, %v1880_v52 }
 0x777   :  { %v1889_v20 = vadd.f32 %v1888_v56, %v1882_v1 }
 0x779   :  { %1890 = vadd.xlane.f32.xlu0 %v1889_v20 }
 0x78f   :  { %301 = vperm.xlu0 %2247, %v3196_v57  }
 0x793   :  { %2290 = vset.pattern.permute.xlu0 %v2487_v53 }
 0x806   :  { %v1891_v39 = vpop.xlane.xlu0 %1890 }
 0x807   :  { %v1892_v22 = vmul.f32 0.001953125, %v1891_v39 }
 0x809   :  { %v1893_v2 = vsub.f32 %v1839_v3, %v1892_v22  ;;  %v1894_v59 = vsub.f32 %v1841_v28, %v1892_v22  ;;  %v1895_v37 = vsub.f32 %v1880_v52, %v1892_v22  ;;  %v1896_v8 = vsub.f32 %v1882_v1, %v1892_v22 }
 0x80b   :  { %v1897_v43 = vmul.f32 %v1893_v2, %v1893_v2  ;;  %v1898_v10 = vmul.f32 %v1894_v59, %v1894_v59  ;;  %v1899_v13 = vmul.f32 %v1895_v37, %v1895_v37  ;;  %v1900_v5 = vmul.f32 %v1896_v8, %v1896_v8 }
 0x80d   :  { %v1901_v50 = vadd.f32 %v1898_v10, %v1897_v43 }
 0x80e   :  { %v302_v27 = vpop.permute.xlu0 %301 }
 0x80f   :  { %v1902_v42 = vadd.f32 %v1901_v50, %v1899_v13 }
 0x811   :  { %v1903_v62 = vadd.f32 %v1902_v42, %v1900_v5 }
 0x813   :  { %1904 = vadd.xlane.f32.xlu1 %v1903_v62 }
 0x824   :  { %283 = vperm.xlu1 %2246, %v279_v60  }
 0x828   :  { %2248 = vset.pattern.permute.xlu1 %v2488_v25 }
 0x8a0   :  { %v1905_v41 = vpop.xlane.xlu1 %1904 }
 0x8a1   :  { %v1906_v21 = vmul.f32 0.001953125, %v1905_v41 }
 0x8a3   :  { %v1907_v7 = vadd.f32 1e-05, %v1906_v21 }
 0x8a4   :  { %v284_v63 = vpop.permute.xlu1 %283 }
 0x8a5   :  { %2299 = vrsqrt.f32 %v1907_v7  ;;  %v291_v29 = vmul.f32 %v284_v63, %v3203_v11  ;;  %v292_v30 = vmul.f32 %v284_v63, %v3206_v55  ;;  %v293_v57 = vmul.f32 %v284_v63, %v3209_v24 }
 0x8a6   :  { %v294_v25 = vmul.f32 %v284_v63, %v3212_v49 }
 0x8a7   :  { %v309_v18 = vadd.f32 %v302_v27, %v291_v29  ;;  %v310_v3 = vadd.f32 %v302_v27, %v292_v30  ;;  %v311_v52 = vadd.f32 %v302_v27, %v293_v57 }
 0x8a8   :  { %v312_v28 = vadd.f32 %v302_v27, %v294_v25 }
 0x8a9   :  { %v317_v19 = vpack.c.bf16 %v309_v18, %v309_v18  ;;  %v318_v12 = vpack.c.bf16 %v310_v3, %v310_v3  ;;  %v319_v16 = vpack.c.bf16 %v311_v52, %v311_v52 }
 0x8ab   :  { %v1927_v20 = vunpack.c.l.bf16 %v317_v19  ;;  %v1928_v55 = vunpack.c.l.bf16 %v318_v12  ;;  %v1929_v39 = vunpack.c.l.bf16 %v319_v16 }
 0x8af   :  { %v2300_v14 = vpop.eup %2299 }
 0x8b0   :  { %v1909_v32 = vmul.f32 %v2301_v6, %v2300_v14 }
 0x8b2   :  { %1912 = vperm.xlu1 %2248, %v1909_v32  }
 0x8b6   :  { %2249 = vset.pattern.permute.xlu1 %v2487_v53  ;;  %v320_v53 = vpack.c.bf16 %v312_v28, %v312_v28 }
 0x8b7   :  { %1920 = vperm.xlu1 %2249, %v2301_v6  }
 0x8b8   :  { %v1930_v24 = vunpack.c.l.bf16 %v320_v53 }
 0x931   :  { %v1913_v1 = vpop.permute.xlu1 %1912 }
 0x932   :  { %v1915_v17 = vmul.f32 %v1913_v1, %v1893_v2  ;;  %v1916_v38 = vmul.f32 %v1913_v1, %v1894_v59  ;;  %v1917_v56 = vmul.f32 %v1913_v1, %v1895_v37  ;;  %v1918_v11 = vmul.f32 %v1913_v1, %v1896_v8 }
 0x936   :  { %v1921_v22 = vpop.permute.xlu1 %1920 }
 0x937   :  { %v1923_v49 = vadd.f32 %v1921_v22, %v1915_v17  ;;  %v1924_v15 = vadd.f32 %v1921_v22, %v1916_v38  ;;  %v1925_v43 = vadd.f32 %v1921_v22, %v1917_v56  ;;  %v1926_v10 = vadd.f32 %v1921_v22, %v1918_v11 }
 0x939   :  { %v1931_v54 = vadd.f32 %v1927_v20, %v1923_v49  ;;  %v1932_v13 = vadd.f32 %v1928_v55, %v1924_v15  ;;  %v1933_v50 = vadd.f32 %v1929_v39, %v1925_v43  ;;  %v1934_v5 = vadd.f32 %v1930_v24, %v1926_v10 }
 0x93b   :  { %vm1935_vm13 = vcmp.gt.f32.partialorder %v1931_v54, 0.0  ;;  %vm1936_vm5 = vcmp.gt.f32.partialorder %v1932_v13, 0.0  ;;  %v1939_v42 = vmul.f32 0.2, %v1931_v54  ;;  %v1940_v2 = vmul.f32 0.2, %v1932_v13 }
 0x93c   :  { %vm1937_vm15 = vcmp.gt.f32.partialorder %v1933_v50, 0.0  ;;  %vm1938_vm1 = vcmp.gt.f32.partialorder %v1934_v5, 0.0  ;;  %v1941_v59 = vmul.f32 0.2, %v1933_v50  ;;  %v1942_v37 = vmul.f32 0.2, %v1934_v5 }
 0x93d   :  { %v1943_v8 = vsel %vm1935_vm13, %v1931_v54, %v1939_v42  ;;  %v1944_v44 = vsel %vm1936_vm5, %v1932_v13, %v1940_v2  ;;  %vm3371_vm13 = vcmp.eq.s32.totalorder %v2741_v34, 1  ;;  %vm3372_vm5 = vcmp.eq.s32.totalorder %v2744_v35, 1 }
 0x93e   :  { %v2250_v62 = vpack.i.bf16 %v1944_v44, %v1943_v8  ;;  %v1945_v4 = vsel %vm1937_vm15, %v1933_v50, %v1941_v59  ;;  %v1946_v60 = vsel %vm1938_vm1, %v1934_v5, %v1942_v37 }
 0x93f   :  { %v2255_v41 = vpack.i.bf16 %v1946_v60, %v1945_v4 }
 0x940   :  { %2251 = vrot.lane.b32.xlu1 %v2250_v62, %s2482_s0 }
 0x944   :  { %2256 = vrot.lane.b32.xlu1 %v2255_v41, %s2482_s0 }
 0x948   :  { %2261 = vrot.lane.b32.xlu1 %v2250_v62, %s2483_s12 }
 0x94c   :  { %2266 = vrot.lane.b32.xlu1 %v2255_v41, %s2483_s12 }
 0x9b2   :  { %v2252_v21 = vpop.permute.xlu1 %2251 }
 0x9b3   :  { %v2254_v7 = vunpack.i.h.bf16 %v2252_v21  ;;  %v2253_v14 = vunpack.i.l.bf16 %v2252_v21 }
 0x9b5   :  { %v1957_v29 = vsel %vm828_vm7, %v2253_v14, %v2254_v7 }
 0x9b6   :  { %v2257_v6 = vpop.permute.xlu1 %2256  ;;  %v1960_v18 = vsel %vm2865_vm9, %v1957_v29, -inf }
 0x9b7   :  { %v2259_v32 = vunpack.i.h.bf16 %v2257_v6  ;;  %v2258_v63 = vunpack.i.l.bf16 %v2257_v6  ;;  %v1964_v53 = vmax.f32 %v1944_v44, %v1960_v18 }
 0x9b9   :  { %v1958_v57 = vsel %vm828_vm7, %v2259_v32, %v2253_v14  ;;  %v1955_v3 = vsel %vm828_vm7, %v2258_v63, %v2259_v32  ;;  %v1956_v52 = vsel %vm828_vm7, %v2254_v7, %v2258_v63 }
 0x9ba   :  { %v2262_v30 = vpop.permute.xlu1 %2261  ;;  %v1959_v28 = vsel %vm3360_vm3, %v1958_v57, -inf  ;;  %v1961_v36 = vsel %vm2906_vm4, %v1956_v52, -inf  ;;  %v1962_v17 = vsel %vm2923_vm0, %v1955_v3, -inf  ;;  %vm3361_vm0 = vcmp.lt.s32.totalorder %v2777_v45, 16 }
 0x9bb   :  { %v2264_v25 = vunpack.i.h.bf16 %v2262_v30  ;;  %v2263_v27 = vunpack.i.l.bf16 %v2262_v30  ;;  %v1963_v56 = vmax.f32 %v1943_v8, %v1959_v28  ;;  %v1965_v55 = vmax.f32 %v1945_v4, %v1961_v36  ;;  %vm3362_vm7 = vmmov %vm3361_vm0 }
 0x9bc   :  { %v1966_v39 = vmax.f32 %v1946_v60, %v1962_v17  ;;  %vm3363_vm9 = vmmov %vm3361_vm0 }
 0x9bd   :  { %v1977_v1 = vsel %vm1095_vm8, %v2263_v27, %v2264_v25  ;;  %vm3364_vm4 = vmmov %vm3361_vm0 }
 0x9be   :  { %v2267_v19 = vpop.permute.xlu1 %2266  ;;  %v1979_v38 = vsel %vm1132_vm6, %v1977_v1, -inf  ;;  %vm3368_vm6 = vcmp.eq.s32.totalorder %v2786_v48, 1 }
 0x9bf   :  { %v2269_v12 = vunpack.i.h.bf16 %v2267_v19  ;;  %v2268_v16 = vunpack.i.l.bf16 %v2267_v19  ;;  %v1983_v24 = vmax.f32 %v1963_v56, %v1979_v38 }
 0x9c1   :  { %v1975_v33 = vsel %vm1095_vm8, %v2268_v16, %v2269_v12  ;;  %v1976_v11 = vsel %vm1095_vm8, %v2264_v25, %v2268_v16  ;;  %v1978_v20 = vsel %vm1095_vm8, %v2269_v12, %v2263_v27  ;;  %vm3365_vm8 = vcmp.eq.s32.totalorder %v2780_v46, 1 }
 0x9c2   :  { %v1980_v40 = vsel %vm3035_vm11, %v1976_v11, -inf  ;;  %v1981_v61 = vsel %vm3085_vm10, %v1975_v33, -inf  ;;  %v1982_v0 = vsel %vm3048_vm12, %v1978_v20, -inf  ;;  %vm3366_vm11 = vcmp.eq.s32.totalorder %v2790_v51, 1 }
 0x9c3   :  { %v1984_v22 = vmax.f32 %v1964_v53, %v1980_v40  ;;  %v1985_v49 = vmax.f32 %v1965_v55, %v1981_v61  ;;  %v1986_v15 = vmax.f32 %v1966_v39, %v1982_v0  ;;  %vm3367_vm12 = vcmp.eq.s32.totalorder %v2783_v47, 1 }
 0x9c4   :  { %vm3369_vm10 = vcmp.eq.s32.totalorder %v3147_v9, 1 }
 0x9c5   :  { %v2270_v43 = vpack.i.bf16 %v1984_v22, %v1983_v24  ;;  %v2275_v10 = vpack.i.bf16 %v1986_v15, %v1985_v49 }
 0x9c7   :  { %2271 = vrot.lane.b32.xlu1 %v2270_v43, %s2479_s5 }
 0x9cb   :  { %2276 = vrot.lane.b32.xlu1 %v2275_v10, %s2479_s5 }
 0x9cf   :  { %2281 = vrot.lane.b32.xlu1 %v2270_v43, %s2485_s23 }
 0x9d3   :  { %2286 = vrot.lane.b32.xlu1 %v2275_v10, %s2485_s23 }
 0xa39   :  { %v2272_v58 = vpop.permute.xlu1 %2271 }
 0xa3a   :  { %v2274_v23 = vunpack.i.h.bf16 %v2272_v58  ;;  %v2273_v26 = vunpack.i.l.bf16 %v2272_v58 }
 0xa3c   :  { %v1997_v5 = vsel %vm3361_vm0, %v2273_v26, %v2274_v23 }
 0xa3d   :  { %v2277_v54 = vpop.permute.xlu1 %2276  ;;  %v2000_v62 = vsel %vm3365_vm8, %v1997_v5, -inf }
 0xa3e   :  { %v2279_v13 = vunpack.i.h.bf16 %v2277_v54  ;;  %v2278_v50 = vunpack.i.l.bf16 %v2277_v54  ;;  %v2004_v32 = vmax.f32 %v1984_v22, %v2000_v62 }
 0xa40   :  { %v1996_v42 = vsel %vm3362_vm7, %v2274_v23, %v2278_v50  ;;  %v1998_v2 = vsel %vm3363_vm9, %v2279_v13, %v2273_v26  ;;  %v1995_v37 = vsel %vm3364_vm4, %v2278_v50, %v2279_v13 }
 0xa41   :  { %v2282_v59 = vpop.permute.xlu1 %2281  ;;  %v1999_v4 = vsel %vm3366_vm11, %v1998_v2, -inf  ;;  %v2001_v60 = vsel %vm3367_vm12, %v1996_v42, -inf  ;;  %v2002_v41 = vsel %vm3368_vm6, %v1995_v37, -inf }
 0xa42   :  { %v2284_v8 = vunpack.i.h.bf16 %v2282_v59  ;;  %v2283_v44 = vunpack.i.l.bf16 %v2282_v59  ;;  %v2003_v63 = vmax.f32 %v1983_v24, %v1999_v4  ;;  %v2005_v29 = vmax.f32 %v1985_v49, %v2001_v60 }
 0xa43   :  { %v2006_v51 = vmax.f32 %v1986_v15, %v2002_v41 }
 0xa44   :  { %v2017_v21 = vsel %vm1417_vm14, %v2283_v44, %v2284_v8 }
 0xa45   :  { %v2287_v7 = vpop.permute.xlu1 %2286  ;;  %v2019_v46 = vsel %vm3369_vm10, %v2017_v21, -inf }
 0xa46   :  { %v2289_v14 = vunpack.i.h.bf16 %v2287_v7  ;;  %v2288_v6 = vunpack.i.l.bf16 %v2287_v7  ;;  %v2023_v52 = vmax.f32 %v2003_v63, %v2019_v46 }
 0xa48   :  { %v2015_v47 = vsel %vm1417_vm14, %v2288_v6, %v2289_v14  ;;  %v2016_v48 = vsel %vm1417_vm14, %v2284_v8, %v2288_v6  ;;  %v2018_v30 = vsel %vm1417_vm14, %v2289_v14, %v2283_v44 }
 0xa49   :  { %v2020_v57 = vsel %vm3370_vm2, %v2016_v48, -inf  ;;  %v2021_v25 = vsel %vm3371_vm13, %v2015_v47, -inf  ;;  %v2022_v9 = vsel %vm3372_vm5, %v2018_v30, -inf }
 0xa4a   :  { %v2024_v27 = vmax.f32 %v2004_v32, %v2020_v57  ;;  %v2025_v18 = vmax.f32 %v2005_v29, %v2021_v25  ;;  %v2026_v3 = vmax.f32 %v2006_v51, %v2022_v9 }
 0xa4c   :  { %v2112_v28 = vpack.c.bf16 %v2024_v27, %v2023_v52  ;;  %v2113_v1 = vpack.c.bf16 %v2026_v3, %v2025_v18 }
 0xa4e   :  { %2043 = vst [vmem:[#allocation13] sm:$0xff] %v2112_v28  ;;  %2044 = vst [vmem:[#allocation13 + $0x8] sm:$0xff] %v2113_v1 }
 0xa4f   :  { %2445 = shalt.err (!%p2442_p10)
}
 0xa50   :  { %s2446_s30 = scalar_lea.hbm %s3329_s6, 256 }
 0xa51   :  { %p2447_p11 = scmp.ne.s32.totalorder %s3329_s6, %s2446_s30  ;;  %p2450_p12 = scmp.lt.u32.totalorder %s2446_s30, %s3329_s6 }
 0xa53   :  { %p2452_p13 = pnand %p2450_p12, %p2447_p11 }
 0xa55   :  { %2455 = shalt.err (!%p2452_p13)
}
 0xa56   :  { %2054 = dma.vmem_to_hbm [thread:$0]  %s2052_s26, 256, %s3329_s6, [#allocation4]  }
 0xa57   :  { %2464 = dma.done.wait [#allocation4], 256  }
 0xa58   :  { %2465 = vsyncadd [#allocation4], 4294967040 }
 0xa59   :  { %2058 = vsyncpa [#allocation3], 1 }
 0xa5a   :  { %2059 = vsyncpa [#allocation6], 1 }
 0xa5b   :  { %2060 = vsyncpa [#allocation9], 1 }
 0xa5c   :  { %2061 = vsyncpa [#allocation12], 1 }
 0xa5d   :  { %2062 = vsyncpa [#allocation4], 1 }

</bundles_post_ra>
